<compile_context>
chip_gen: v5e
topology: v5e:2x2
jax: 0.10.0
libtpu: 0.0.40
codegen_flags: <defaults>
</compile_context>

<pallas_src>
import functools

import jax
import jax.numpy as jnp
from jax.experimental import pallas as pl
from jax.experimental.pallas import tpu as pltpu


# ----------------------------------------------------------------------------
# Fused Pallas kernel: (max|avg)pool(stride=1) + 1x1 conv (BN-scale folded) +
# bias + ReLU, one batch element per grid step.
# ----------------------------------------------------------------------------
def _pool_conv_bn_relu_kernel(x_ref, w_ref, b_ref, o_ref, *, k, typ, Ho, Wo,
                              Cin, Cout):
    # x_ref block: (1, Cin, Hp, Wp) padded activation (pad = -inf for max,
    # 0 for avg).  Load once, slice the value for the k*k window shifts.
    x = x_ref[0]                                   # (Cin, Hp, Wp) f32

    pooled = x[:, 0:Ho, 0:Wo]
    if typ == "max":
        for dh in range(k):
            for dw in range(k):
                if dh == 0 and dw == 0:
                    continue
                pooled = jnp.maximum(pooled, x[:, dh:dh + Ho, dw:dw + Wo])
    else:  # avg, count_include_pad=True (PyTorch default)
        for dh in range(k):
            for dw in range(k):
                if dh == 0 and dw == 0:
                    continue
                pooled = pooled + x[:, dh:dh + Ho, dw:dw + Wo]
        pooled = pooled * (1.0 / (k * k))

    # 1x1 conv over channels with scalar weights from SMEM (BN scale already
    # folded into w), bias add, ReLU.  Cin/Cout are tiny -> pure VPU.
    for co in range(Cout):
        acc = pooled[0] * w_ref[co * Cin + 0]
        for ci in range(1, Cin):
            acc = acc + pooled[ci] * w_ref[co * Cin + ci]
        acc = acc + b_ref[co]
        o_ref[0, co, :, :] = jnp.maximum(acc, 0.0).astype(o_ref.dtype)


# ----------------------------------------------------------------------------
# Wrapper glue (layout only).
# ----------------------------------------------------------------------------
def pixel_shuffle_nchw(x, r):
    # TODO(synk): PixelShuffle is a pure channel->space relayout; kept as an
    # XLA reshape/transpose outside the Pallas kernel.
    N, C, H, W = x.shape
    Co = C // (r * r)
    x = x.reshape(N, Co, r, r, H, W)
    x = jnp.transpose(x, (0, 1, 4, 2, 5, 3))
    return x.reshape(N, Co, H * r, W * r)


def deconv_unit_pool_forward(params, x, *, kernel_size, padding,
                             upscale_factor=2, typ="max"):
    """x: (N, in_chs, H, W) NCHW float.  Returns (N, out_chs, Ho, Wo)."""
    r = upscale_factor
    xs = pixel_shuffle_nchw(x.astype(jnp.float32), r)     # (N, Cin, Hs, Ws)
    N, Cin, Hs, Ws = xs.shape
    k, p = kernel_size, padding
    Ho = Hs + 2 * p - k + 1
    Wo = Ws + 2 * p - k + 1

    pad_val = -jnp.inf if typ == "max" else 0.0
    xp = jnp.pad(xs, ((0, 0), (0, 0), (p, p), (p, p)), constant_values=pad_val)
    Hp, Wp = Hs + 2 * p, Ws + 2 * p

    # Fold BatchNorm (inference mode: running stats) into the 1x1 weight/bias.
    w = params["w"]                                        # (Cout, Cin, 1, 1)
    gamma, beta, mean, var = params["bn"]
    scale = gamma * jax.lax.rsqrt(var + 1e-5)
    bias = (beta - mean * scale).astype(jnp.float32)
    Cout = w.shape[0]
    w_folded = (w.reshape(Cout, Cin) * scale[:, None]).astype(jnp.float32)
    w_flat = w_folded.reshape(-1)                          # (Cout*Cin,) -> SMEM

    kernel = functools.partial(_pool_conv_bn_relu_kernel, k=k, typ=typ,
                               Ho=Ho, Wo=Wo, Cin=Cin, Cout=Cout)
    out = pl.pallas_call(
        kernel,
        out_shape=jax.ShapeDtypeStruct((N, Cout, Ho, Wo), jnp.float32),
        grid=(N,),
        in_specs=[
            pl.BlockSpec((1, Cin, Hp, Wp), lambda n: (n, 0, 0, 0)),
            pl.BlockSpec(memory_space=pltpu.MemorySpace.SMEM),   # w_flat
            pl.BlockSpec(memory_space=pltpu.MemorySpace.SMEM),   # bias
        ],
        out_specs=pl.BlockSpec((1, Cout, Ho, Wo), lambda n: (n, 0, 0, 0)),
        compiler_params=pltpu.CompilerParams(
            dimension_semantics=("parallel",)),
    )(xp, w_flat, bias)
    return out


# ----------------------------------------------------------------------------
# Pure-JAX reference (for correctness checking) and parameter init.
# ----------------------------------------------------------------------------
def reference_forward(params, x, *, kernel_size, padding, upscale_factor=2,
                      typ="max"):
    r = upscale_factor
    xs = pixel_shuffle_nchw(x.astype(jnp.float32), r)
    k, p = kernel_size, padding
    pad_cfg = [(0, 0), (0, 0), (p, p), (p, p)]
    if typ == "max":
        pooled = jax.lax.reduce_window(xs, -jnp.inf, jax.lax.max,
                                       (1, 1, k, k), (1, 1, 1, 1), pad_cfg)
    else:
        pooled = jax.lax.reduce_window(xs, 0.0, jax.lax.add,
                                       (1, 1, k, k), (1, 1, 1, 1), pad_cfg)
        pooled = pooled / (k * k)
    w = params["w"].reshape(params["w"].shape[0], -1)       # (Cout, Cin)
    gamma, beta, mean, var = params["bn"]
    scale = gamma * jax.lax.rsqrt(var + 1e-5)
    bias = beta - mean * scale
    y = jnp.einsum("oc,nchw->nohw", w, pooled)
    y = y * scale[None, :, None, None] + bias[None, :, None, None]
    return jnp.maximum(y, 0.0)


def init_params(key, in_chs, out_chs, upscale_factor=2):
    cin = in_chs // (upscale_factor * upscale_factor)
    k1, k2, k3, k4 = jax.random.split(key, 4)
    w = jax.random.normal(k1, (out_chs, cin, 1, 1), jnp.float32) * jnp.sqrt(2.0 / cin)
    gamma = 1.0 + 0.1 * jax.random.normal(k2, (out_chs,), jnp.float32)
    beta = 0.1 * jax.random.normal(k3, (out_chs,), jnp.float32)
    mean = 0.1 * jax.random.normal(k4, (out_chs,), jnp.float32)
    var = jnp.ones((out_chs,), jnp.float32)
    return {"w": w, "bn": (gamma, beta, mean, var)}


if __name__ == "__main__":
    key = jax.random.PRNGKey(0)
    kx, kp = jax.random.split(key)

    in_chs, out_chs, r = 16, 8, 2
    kernel_size, padding = 3, 1
    x = jax.random.normal(kx, (2, in_chs, 16, 16), jnp.float32)
    params = init_params(kp, in_chs, out_chs, r)

    for typ in ("max", "avg"):
        fwd = jax.jit(functools.partial(
            deconv_unit_pool_forward, kernel_size=kernel_size, padding=padding,
            upscale_factor=r, typ=typ))
        y = jax.block_until_ready(fwd(params, x))
        assert y.shape == (2, out_chs, 32, 32), y.shape
        assert bool(jnp.all(jnp.isfinite(y)))
        assert bool(jnp.all(y >= 0.0))           # ReLU output
        ref = reference_forward(params, x, kernel_size=kernel_size,
                                padding=padding, upscale_factor=r, typ=typ)
        assert bool(jnp.allclose(y, ref, atol=1e-4, rtol=1e-4)), (
            f"mismatch for typ={typ}: max abs diff {float(jnp.max(jnp.abs(y - ref)))}")

    print("KERNEL_OK")
</pallas_src>

<mosaic_0001>
module attributes {stable_mosaic.version = 11 : i64} {
  func.func @_pool_conv_bn_relu_kernel(%arg0: i32, %arg1: memref<1x4x34x34xf32, #tpu.memory_space<vmem>>, %arg2: memref<32xf32, #tpu.memory_space<smem>>, %arg3: memref<8xf32, #tpu.memory_space<smem>>, %arg4: memref<1x8x32x32xf32, #tpu.memory_space<vmem>>) attributes {dimension_semantics = [#tpu.dimension_semantics<parallel>], iteration_bounds = array<i64: 2>, scalar_prefetch = 0 : i64, scratch_operands = 0 : i64, tpu.core_type = #tpu.core_type<tc>, window_params = [{transform_indices = @transform_0, window_bounds = array<i64: 1, 4, 34, 34>}, {transform_indices = @transform_1, window_bounds = array<i64: 32>}, {transform_indices = @transform_2, window_bounds = array<i64: 8>}, {transform_indices = @transform_3, window_bounds = array<i64: 1, 8, 32, 32>}]} {
    %c0 = arith.constant 0 : index
    %c0_0 = arith.constant 0 : index
    %c0_1 = arith.constant 0 : index
    %c0_2 = arith.constant 0 : index
    %0 = vector.load %arg1[%c0, %c0_0, %c0_1, %c0_2] : memref<1x4x34x34xf32, #tpu.memory_space<vmem>>, vector<1x4x34x34xf32>
    %1 = vector.shape_cast %0 : vector<1x4x34x34xf32> to vector<4x34x34xf32>
    %2 = vector.extract_strided_slice %1 {offsets = [0, 0, 0], sizes = [4, 32, 32], strides = [1, 1, 1]} : vector<4x34x34xf32> to vector<4x32x32xf32>
    %3 = vector.extract_strided_slice %1 {offsets = [0, 0, 1], sizes = [4, 32, 32], strides = [1, 1, 1]} : vector<4x34x34xf32> to vector<4x32x32xf32>
    %4 = arith.maximumf %2, %3 : vector<4x32x32xf32>
    %5 = vector.extract_strided_slice %1 {offsets = [0, 0, 2], sizes = [4, 32, 32], strides = [1, 1, 1]} : vector<4x34x34xf32> to vector<4x32x32xf32>
    %6 = arith.maximumf %4, %5 : vector<4x32x32xf32>
    %7 = vector.extract_strided_slice %1 {offsets = [0, 1, 0], sizes = [4, 32, 32], strides = [1, 1, 1]} : vector<4x34x34xf32> to vector<4x32x32xf32>
    %8 = arith.maximumf %6, %7 : vector<4x32x32xf32>
    %9 = vector.extract_strided_slice %1 {offsets = [0, 1, 1], sizes = [4, 32, 32], strides = [1, 1, 1]} : vector<4x34x34xf32> to vector<4x32x32xf32>
    %10 = arith.maximumf %8, %9 : vector<4x32x32xf32>
    %11 = vector.extract_strided_slice %1 {offsets = [0, 1, 2], sizes = [4, 32, 32], strides = [1, 1, 1]} : vector<4x34x34xf32> to vector<4x32x32xf32>
    %12 = arith.maximumf %10, %11 : vector<4x32x32xf32>
    %13 = vector.extract_strided_slice %1 {offsets = [0, 2, 0], sizes = [4, 32, 32], strides = [1, 1, 1]} : vector<4x34x34xf32> to vector<4x32x32xf32>
    %14 = arith.maximumf %12, %13 : vector<4x32x32xf32>
    %15 = vector.extract_strided_slice %1 {offsets = [0, 2, 1], sizes = [4, 32, 32], strides = [1, 1, 1]} : vector<4x34x34xf32> to vector<4x32x32xf32>
    %16 = arith.maximumf %14, %15 : vector<4x32x32xf32>
    %17 = vector.extract_strided_slice %1 {offsets = [0, 2, 2], sizes = [4, 32, 32], strides = [1, 1, 1]} : vector<4x34x34xf32> to vector<4x32x32xf32>
    %18 = arith.maximumf %16, %17 : vector<4x32x32xf32>
    %19 = vector.extract_strided_slice %18 {offsets = [0, 0, 0], sizes = [1, 32, 32], strides = [1, 1, 1]} : vector<4x32x32xf32> to vector<1x32x32xf32>
    %20 = vector.shape_cast %19 : vector<1x32x32xf32> to vector<32x32xf32>
    %c0_3 = arith.constant 0 : index
    %21 = memref.load %arg2[%c0_3] : memref<32xf32, #tpu.memory_space<smem>>
    %22 = vector.broadcast %21 : f32 to vector<32x32xf32>
    %23 = arith.mulf %20, %22 : vector<32x32xf32>
    %24 = vector.extract_strided_slice %18 {offsets = [1, 0, 0], sizes = [1, 32, 32], strides = [1, 1, 1]} : vector<4x32x32xf32> to vector<1x32x32xf32>
    %25 = vector.shape_cast %24 : vector<1x32x32xf32> to vector<32x32xf32>
    %c1 = arith.constant 1 : index
    %26 = memref.load %arg2[%c1] : memref<32xf32, #tpu.memory_space<smem>>
    %27 = vector.broadcast %26 : f32 to vector<32x32xf32>
    %28 = arith.mulf %25, %27 : vector<32x32xf32>
    %29 = arith.addf %23, %28 : vector<32x32xf32>
    %30 = vector.extract_strided_slice %18 {offsets = [2, 0, 0], sizes = [1, 32, 32], strides = [1, 1, 1]} : vector<4x32x32xf32> to vector<1x32x32xf32>
    %31 = vector.shape_cast %30 : vector<1x32x32xf32> to vector<32x32xf32>
    %c2 = arith.constant 2 : index
    %32 = memref.load %arg2[%c2] : memref<32xf32, #tpu.memory_space<smem>>
    %33 = vector.broadcast %32 : f32 to vector<32x32xf32>
    %34 = arith.mulf %31, %33 : vector<32x32xf32>
    %35 = arith.addf %29, %34 : vector<32x32xf32>
    %36 = vector.extract_strided_slice %18 {offsets = [3, 0, 0], sizes = [1, 32, 32], strides = [1, 1, 1]} : vector<4x32x32xf32> to vector<1x32x32xf32>
    %37 = vector.shape_cast %36 : vector<1x32x32xf32> to vector<32x32xf32>
    %c3 = arith.constant 3 : index
    %38 = memref.load %arg2[%c3] : memref<32xf32, #tpu.memory_space<smem>>
    %39 = vector.broadcast %38 : f32 to vector<32x32xf32>
    %40 = arith.mulf %37, %39 : vector<32x32xf32>
    %41 = arith.addf %35, %40 : vector<32x32xf32>
    %c0_4 = arith.constant 0 : index
    %42 = memref.load %arg3[%c0_4] : memref<8xf32, #tpu.memory_space<smem>>
    %43 = vector.broadcast %42 : f32 to vector<32x32xf32>
    %44 = arith.addf %41, %43 : vector<32x32xf32>
    %cst = arith.constant 0.000000e+00 : f32
    %45 = vector.broadcast %cst : f32 to vector<32x32xf32>
    %46 = arith.maximumf %44, %45 : vector<32x32xf32>
    %c0_5 = arith.constant 0 : index
    %c0_6 = arith.constant 0 : index
    %c0_7 = arith.constant 0 : index
    %c0_8 = arith.constant 0 : index
    %47 = vector.load %arg4[%c0_5, %c0_6, %c0_7, %c0_8] : memref<1x8x32x32xf32, #tpu.memory_space<vmem>>, vector<1x1x32x32xf32>
    %48 = vector.shape_cast %47 : vector<1x1x32x32xf32> to vector<32x32xf32>
    %49 = vector.shape_cast %46 : vector<32x32xf32> to vector<1x1x32x32xf32>
    tpu.vector_store %arg4[%c0_5, %c0_6, %c0_7, %c0_8], %49 {strides = array<i32>} : memref<1x8x32x32xf32, #tpu.memory_space<vmem>>, vector<1x1x32x32xf32>,
    %50 = vector.extract_strided_slice %18 {offsets = [0, 0, 0], sizes = [1, 32, 32], strides = [1, 1, 1]} : vector<4x32x32xf32> to vector<1x32x32xf32>
    %51 = vector.shape_cast %50 : vector<1x32x32xf32> to vector<32x32xf32>
    %c4 = arith.constant 4 : index
    %52 = memref.load %arg2[%c4] : memref<32xf32, #tpu.memory_space<smem>>
    %53 = vector.broadcast %52 : f32 to vector<32x32xf32>
    %54 = arith.mulf %51, %53 : vector<32x32xf32>
    %55 = vector.extract_strided_slice %18 {offsets = [1, 0, 0], sizes = [1, 32, 32], strides = [1, 1, 1]} : vector<4x32x32xf32> to vector<1x32x32xf32>
    %56 = vector.shape_cast %55 : vector<1x32x32xf32> to vector<32x32xf32>
    %c5 = arith.constant 5 : index
    %57 = memref.load %arg2[%c5] : memref<32xf32, #tpu.memory_space<smem>>
    %58 = vector.broadcast %57 : f32 to vector<32x32xf32>
    %59 = arith.mulf %56, %58 : vector<32x32xf32>
    %60 = arith.addf %54, %59 : vector<32x32xf32>
    %61 = vector.extract_strided_slice %18 {offsets = [2, 0, 0], sizes = [1, 32, 32], strides = [1, 1, 1]} : vector<4x32x32xf32> to vector<1x32x32xf32>
    %62 = vector.shape_cast %61 : vector<1x32x32xf32> to vector<32x32xf32>
    %c6 = arith.constant 6 : index
    %63 = memref.load %arg2[%c6] : memref<32xf32, #tpu.memory_space<smem>>
    %64 = vector.broadcast %63 : f32 to vector<32x32xf32>
    %65 = arith.mulf %62, %64 : vector<32x32xf32>
    %66 = arith.addf %60, %65 : vector<32x32xf32>
    %67 = vector.extract_strided_slice %18 {offsets = [3, 0, 0], sizes = [1, 32, 32], strides = [1, 1, 1]} : vector<4x32x32xf32> to vector<1x32x32xf32>
    %68 = vector.shape_cast %67 : vector<1x32x32xf32> to vector<32x32xf32>
    %c7 = arith.constant 7 : index
    %69 = memref.load %arg2[%c7] : memref<32xf32, #tpu.memory_space<smem>>
    %70 = vector.broadcast %69 : f32 to vector<32x32xf32>
    %71 = arith.mulf %68, %70 : vector<32x32xf32>
    %72 = arith.addf %66, %71 : vector<32x32xf32>
    %c1_9 = arith.constant 1 : index
    %73 = memref.load %arg3[%c1_9] : memref<8xf32, #tpu.memory_space<smem>>
    %74 = vector.broadcast %73 : f32 to vector<32x32xf32>
    %75 = arith.addf %72, %74 : vector<32x32xf32>
    %cst_10 = arith.constant 0.000000e+00 : f32
    %76 = vector.broadcast %cst_10 : f32 to vector<32x32xf32>
    %77 = arith.maximumf %75, %76 : vector<32x32xf32>
    %c0_11 = arith.constant 0 : index
    %c1_12 = arith.constant 1 : index
    %c0_13 = arith.constant 0 : index
    %c0_14 = arith.constant 0 : index
    %78 = vector.load %arg4[%c0_11, %c1_12, %c0_13, %c0_14] : memref<1x8x32x32xf32, #tpu.memory_space<vmem>>, vector<1x1x32x32xf32>
    %79 = vector.shape_cast %78 : vector<1x1x32x32xf32> to vector<32x32xf32>
    %80 = vector.shape_cast %77 : vector<32x32xf32> to vector<1x1x32x32xf32>
    tpu.vector_store %arg4[%c0_11, %c1_12, %c0_13, %c0_14], %80 {strides = array<i32>} : memref<1x8x32x32xf32, #tpu.memory_space<vmem>>, vector<1x1x32x32xf32>,
    %81 = vector.extract_strided_slice %18 {offsets = [0, 0, 0], sizes = [1, 32, 32], strides = [1, 1, 1]} : vector<4x32x32xf32> to vector<1x32x32xf32>
    %82 = vector.shape_cast %81 : vector<1x32x32xf32> to vector<32x32xf32>
    %c8 = arith.constant 8 : index
    %83 = memref.load %arg2[%c8] : memref<32xf32, #tpu.memory_space<smem>>
    %84 = vector.broadcast %83 : f32 to vector<32x32xf32>
    %85 = arith.mulf %82, %84 : vector<32x32xf32>
    %86 = vector.extract_strided_slice %18 {offsets = [1, 0, 0], sizes = [1, 32, 32], strides = [1, 1, 1]} : vector<4x32x32xf32> to vector<1x32x32xf32>
    %87 = vector.shape_cast %86 : vector<1x32x32xf32> to vector<32x32xf32>
    %c9 = arith.constant 9 : index
    %88 = memref.load %arg2[%c9] : memref<32xf32, #tpu.memory_space<smem>>
    %89 = vector.broadcast %88 : f32 to vector<32x32xf32>
    %90 = arith.mulf %87, %89 : vector<32x32xf32>
    %91 = arith.addf %85, %90 : vector<32x32xf32>
    %92 = vector.extract_strided_slice %18 {offsets = [2, 0, 0], sizes = [1, 32, 32], strides = [1, 1, 1]} : vector<4x32x32xf32> to vector<1x32x32xf32>
    %93 = vector.shape_cast %92 : vector<1x32x32xf32> to vector<32x32xf32>
    %c10 = arith.constant 10 : index
    %94 = memref.load %arg2[%c10] : memref<32xf32, #tpu.memory_space<smem>>
    %95 = vector.broadcast %94 : f32 to vector<32x32xf32>
    %96 = arith.mulf %93, %95 : vector<32x32xf32>
    %97 = arith.addf %91, %96 : vector<32x32xf32>
    %98 = vector.extract_strided_slice %18 {offsets = [3, 0, 0], sizes = [1, 32, 32], strides = [1, 1, 1]} : vector<4x32x32xf32> to vector<1x32x32xf32>
    %99 = vector.shape_cast %98 : vector<1x32x32xf32> to vector<32x32xf32>
    %c11 = arith.constant 11 : index
    %100 = memref.load %arg2[%c11] : memref<32xf32, #tpu.memory_space<smem>>
    %101 = vector.broadcast %100 : f32 to vector<32x32xf32>
    %102 = arith.mulf %99, %101 : vector<32x32xf32>
    %103 = arith.addf %97, %102 : vector<32x32xf32>
    %c2_15 = arith.constant 2 : index
    %104 = memref.load %arg3[%c2_15] : memref<8xf32, #tpu.memory_space<smem>>
    %105 = vector.broadcast %104 : f32 to vector<32x32xf32>
    %106 = arith.addf %103, %105 : vector<32x32xf32>
    %cst_16 = arith.constant 0.000000e+00 : f32
    %107 = vector.broadcast %cst_16 : f32 to vector<32x32xf32>
    %108 = arith.maximumf %106, %107 : vector<32x32xf32>
    %c0_17 = arith.constant 0 : index
    %c2_18 = arith.constant 2 : index
    %c0_19 = arith.constant 0 : index
    %c0_20 = arith.constant 0 : index
    %109 = vector.load %arg4[%c0_17, %c2_18, %c0_19, %c0_20] : memref<1x8x32x32xf32, #tpu.memory_space<vmem>>, vector<1x1x32x32xf32>
    %110 = vector.shape_cast %109 : vector<1x1x32x32xf32> to vector<32x32xf32>
    %111 = vector.shape_cast %108 : vector<32x32xf32> to vector<1x1x32x32xf32>
    tpu.vector_store %arg4[%c0_17, %c2_18, %c0_19, %c0_20], %111 {strides = array<i32>} : memref<1x8x32x32xf32, #tpu.memory_space<vmem>>, vector<1x1x32x32xf32>,
    %112 = vector.extract_strided_slice %18 {offsets = [0, 0, 0], sizes = [1, 32, 32], strides = [1, 1, 1]} : vector<4x32x32xf32> to vector<1x32x32xf32>
    %113 = vector.shape_cast %112 : vector<1x32x32xf32> to vector<32x32xf32>
    %c12 = arith.constant 12 : index
    %114 = memref.load %arg2[%c12] : memref<32xf32, #tpu.memory_space<smem>>
    %115 = vector.broadcast %114 : f32 to vector<32x32xf32>
    %116 = arith.mulf %113, %115 : vector<32x32xf32>
    %117 = vector.extract_strided_slice %18 {offsets = [1, 0, 0], sizes = [1, 32, 32], strides = [1, 1, 1]} : vector<4x32x32xf32> to vector<1x32x32xf32>
    %118 = vector.shape_cast %117 : vector<1x32x32xf32> to vector<32x32xf32>
    %c13 = arith.constant 13 : index
    %119 = memref.load %arg2[%c13] : memref<32xf32, #tpu.memory_space<smem>>
    %120 = vector.broadcast %119 : f32 to vector<32x32xf32>
    %121 = arith.mulf %118, %120 : vector<32x32xf32>
    %122 = arith.addf %116, %121 : vector<32x32xf32>
    %123 = vector.extract_strided_slice %18 {offsets = [2, 0, 0], sizes = [1, 32, 32], strides = [1, 1, 1]} : vector<4x32x32xf32> to vector<1x32x32xf32>
    %124 = vector.shape_cast %123 : vector<1x32x32xf32> to vector<32x32xf32>
    %c14 = arith.constant 14 : index
    %125 = memref.load %arg2[%c14] : memref<32xf32, #tpu.memory_space<smem>>
    %126 = vector.broadcast %125 : f32 to vector<32x32xf32>
    %127 = arith.mulf %124, %126 : vector<32x32xf32>
    %128 = arith.addf %122, %127 : vector<32x32xf32>
    %129 = vector.extract_strided_slice %18 {offsets = [3, 0, 0], sizes = [1, 32, 32], strides = [1, 1, 1]} : vector<4x32x32xf32> to vector<1x32x32xf32>
    %130 = vector.shape_cast %129 : vector<1x32x32xf32> to vector<32x32xf32>
    %c15 = arith.constant 15 : index
    %131 = memref.load %arg2[%c15] : memref<32xf32, #tpu.memory_space<smem>>
    %132 = vector.broadcast %131 : f32 to vector<32x32xf32>
    %133 = arith.mulf %130, %132 : vector<32x32xf32>
    %134 = arith.addf %128, %133 : vector<32x32xf32>
    %c3_21 = arith.constant 3 : index
    %135 = memref.load %arg3[%c3_21] : memref<8xf32, #tpu.memory_space<smem>>
    %136 = vector.broadcast %135 : f32 to vector<32x32xf32>
    %137 = arith.addf %134, %136 : vector<32x32xf32>
    %cst_22 = arith.constant 0.000000e+00 : f32
    %138 = vector.broadcast %cst_22 : f32 to vector<32x32xf32>
    %139 = arith.maximumf %137, %138 : vector<32x32xf32>
    %c0_23 = arith.constant 0 : index
    %c3_24 = arith.constant 3 : index
    %c0_25 = arith.constant 0 : index
    %c0_26 = arith.constant 0 : index
    %140 = vector.load %arg4[%c0_23, %c3_24, %c0_25, %c0_26] : memref<1x8x32x32xf32, #tpu.memory_space<vmem>>, vector<1x1x32x32xf32>
    %141 = vector.shape_cast %140 : vector<1x1x32x32xf32> to vector<32x32xf32>
    %142 = vector.shape_cast %139 : vector<32x32xf32> to vector<1x1x32x32xf32>
    tpu.vector_store %arg4[%c0_23, %c3_24, %c0_25, %c0_26], %142 {strides = array<i32>} : memref<1x8x32x32xf32, #tpu.memory_space<vmem>>, vector<1x1x32x32xf32>,
    %143 = vector.extract_strided_slice %18 {offsets = [0, 0, 0], sizes = [1, 32, 32], strides = [1, 1, 1]} : vector<4x32x32xf32> to vector<1x32x32xf32>
    %144 = vector.shape_cast %143 : vector<1x32x32xf32> to vector<32x32xf32>
    %c16 = arith.constant 16 : index
    %145 = memref.load %arg2[%c16] : memref<32xf32, #tpu.memory_space<smem>>
    %146 = vector.broadcast %145 : f32 to vector<32x32xf32>
    %147 = arith.mulf %144, %146 : vector<32x32xf32>
    %148 = vector.extract_strided_slice %18 {offsets = [1, 0, 0], sizes = [1, 32, 32], strides = [1, 1, 1]} : vector<4x32x32xf32> to vector<1x32x32xf32>
    %149 = vector.shape_cast %148 : vector<1x32x32xf32> to vector<32x32xf32>
    %c17 = arith.constant 17 : index
    %150 = memref.load %arg2[%c17] : memref<32xf32, #tpu.memory_space<smem>>
    %151 = vector.broadcast %150 : f32 to vector<32x32xf32>
    %152 = arith.mulf %149, %151 : vector<32x32xf32>
    %153 = arith.addf %147, %152 : vector<32x32xf32>
    %154 = vector.extract_strided_slice %18 {offsets = [2, 0, 0], sizes = [1, 32, 32], strides = [1, 1, 1]} : vector<4x32x32xf32> to vector<1x32x32xf32>
    %155 = vector.shape_cast %154 : vector<1x32x32xf32> to vector<32x32xf32>
    %c18 = arith.constant 18 : index
    %156 = memref.load %arg2[%c18] : memref<32xf32, #tpu.memory_space<smem>>
    %157 = vector.broadcast %156 : f32 to vector<32x32xf32>
    %158 = arith.mulf %155, %157 : vector<32x32xf32>
    %159 = arith.addf %153, %158 : vector<32x32xf32>
    %160 = vector.extract_strided_slice %18 {offsets = [3, 0, 0], sizes = [1, 32, 32], strides = [1, 1, 1]} : vector<4x32x32xf32> to vector<1x32x32xf32>
    %161 = vector.shape_cast %160 : vector<1x32x32xf32> to vector<32x32xf32>
    %c19 = arith.constant 19 : index
    %162 = memref.load %arg2[%c19] : memref<32xf32, #tpu.memory_space<smem>>
    %163 = vector.broadcast %162 : f32 to vector<32x32xf32>
    %164 = arith.mulf %161, %163 : vector<32x32xf32>
    %165 = arith.addf %159, %164 : vector<32x32xf32>
    %c4_27 = arith.constant 4 : index
    %166 = memref.load %arg3[%c4_27] : memref<8xf32, #tpu.memory_space<smem>>
    %167 = vector.broadcast %166 : f32 to vector<32x32xf32>
    %168 = arith.addf %165, %167 : vector<32x32xf32>
    %cst_28 = arith.constant 0.000000e+00 : f32
    %169 = vector.broadcast %cst_28 : f32 to vector<32x32xf32>
    %170 = arith.maximumf %168, %169 : vector<32x32xf32>
    %c0_29 = arith.constant 0 : index
    %c4_30 = arith.constant 4 : index
    %c0_31 = arith.constant 0 : index
    %c0_32 = arith.constant 0 : index
    %171 = vector.load %arg4[%c0_29, %c4_30, %c0_31, %c0_32] : memref<1x8x32x32xf32, #tpu.memory_space<vmem>>, vector<1x1x32x32xf32>
    %172 = vector.shape_cast %171 : vector<1x1x32x32xf32> to vector<32x32xf32>
    %173 = vector.shape_cast %170 : vector<32x32xf32> to vector<1x1x32x32xf32>
    tpu.vector_store %arg4[%c0_29, %c4_30, %c0_31, %c0_32], %173 {strides = array<i32>} : memref<1x8x32x32xf32, #tpu.memory_space<vmem>>, vector<1x1x32x32xf32>,
    %174 = vector.extract_strided_slice %18 {offsets = [0, 0, 0], sizes = [1, 32, 32], strides = [1, 1, 1]} : vector<4x32x32xf32> to vector<1x32x32xf32>
    %175 = vector.shape_cast %174 : vector<1x32x32xf32> to vector<32x32xf32>
    %c20 = arith.constant 20 : index
    %176 = memref.load %arg2[%c20] : memref<32xf32, #tpu.memory_space<smem>>
    %177 = vector.broadcast %176 : f32 to vector<32x32xf32>
    %178 = arith.mulf %175, %177 : vector<32x32xf32>
    %179 = vector.extract_strided_slice %18 {offsets = [1, 0, 0], sizes = [1, 32, 32], strides = [1, 1, 1]} : vector<4x32x32xf32> to vector<1x32x32xf32>
    %180 = vector.shape_cast %179 : vector<1x32x32xf32> to vector<32x32xf32>
    %c21 = arith.constant 21 : index
    %181 = memref.load %arg2[%c21] : memref<32xf32, #tpu.memory_space<smem>>
    %182 = vector.broadcast %181 : f32 to vector<32x32xf32>
    %183 = arith.mulf %180, %182 : vector<32x32xf32>
    %184 = arith.addf %178, %183 : vector<32x32xf32>
    %185 = vector.extract_strided_slice %18 {offsets = [2, 0, 0], sizes = [1, 32, 32], strides = [1, 1, 1]} : vector<4x32x32xf32> to vector<1x32x32xf32>
    %186 = vector.shape_cast %185 : vector<1x32x32xf32> to vector<32x32xf32>
    %c22 = arith.constant 22 : index
    %187 = memref.load %arg2[%c22] : memref<32xf32, #tpu.memory_space<smem>>
    %188 = vector.broadcast %187 : f32 to vector<32x32xf32>
    %189 = arith.mulf %186, %188 : vector<32x32xf32>
    %190 = arith.addf %184, %189 : vector<32x32xf32>
    %191 = vector.extract_strided_slice %18 {offsets = [3, 0, 0], sizes = [1, 32, 32], strides = [1, 1, 1]} : vector<4x32x32xf32> to vector<1x32x32xf32>
    %192 = vector.shape_cast %191 : vector<1x32x32xf32> to vector<32x32xf32>
    %c23 = arith.constant 23 : index
    %193 = memref.load %arg2[%c23] : memref<32xf32, #tpu.memory_space<smem>>
    %194 = vector.broadcast %193 : f32 to vector<32x32xf32>
    %195 = arith.mulf %192, %194 : vector<32x32xf32>
    %196 = arith.addf %190, %195 : vector<32x32xf32>
    %c5_33 = arith.constant 5 : index
    %197 = memref.load %arg3[%c5_33] : memref<8xf32, #tpu.memory_space<smem>>
    %198 = vector.broadcast %197 : f32 to vector<32x32xf32>
    %199 = arith.addf %196, %198 : vector<32x32xf32>
    %cst_34 = arith.constant 0.000000e+00 : f32
    %200 = vector.broadcast %cst_34 : f32 to vector<32x32xf32>
    %201 = arith.maximumf %199, %200 : vector<32x32xf32>
    %c0_35 = arith.constant 0 : index
    %c5_36 = arith.constant 5 : index
    %c0_37 = arith.constant 0 : index
    %c0_38 = arith.constant 0 : index
    %202 = vector.load %arg4[%c0_35, %c5_36, %c0_37, %c0_38] : memref<1x8x32x32xf32, #tpu.memory_space<vmem>>, vector<1x1x32x32xf32>
    %203 = vector.shape_cast %202 : vector<1x1x32x32xf32> to vector<32x32xf32>
    %204 = vector.shape_cast %201 : vector<32x32xf32> to vector<1x1x32x32xf32>
    tpu.vector_store %arg4[%c0_35, %c5_36, %c0_37, %c0_38], %204 {strides = array<i32>} : memref<1x8x32x32xf32, #tpu.memory_space<vmem>>, vector<1x1x32x32xf32>,
    %205 = vector.extract_strided_slice %18 {offsets = [0, 0, 0], sizes = [1, 32, 32], strides = [1, 1, 1]} : vector<4x32x32xf32> to vector<1x32x32xf32>
    %206 = vector.shape_cast %205 : vector<1x32x32xf32> to vector<32x32xf32>
    %c24 = arith.constant 24 : index
    %207 = memref.load %arg2[%c24] : memref<32xf32, #tpu.memory_space<smem>>
    %208 = vector.broadcast %207 : f32 to vector<32x32xf32>
    %209 = arith.mulf %206, %208 : vector<32x32xf32>
    %210 = vector.extract_strided_slice %18 {offsets = [1, 0, 0], sizes = [1, 32, 32], strides = [1, 1, 1]} : vector<4x32x32xf32> to vector<1x32x32xf32>
    %211 = vector.shape_cast %210 : vector<1x32x32xf32> to vector<32x32xf32>
    %c25 = arith.constant 25 : index
    %212 = memref.load %arg2[%c25] : memref<32xf32, #tpu.memory_space<smem>>
    %213 = vector.broadcast %212 : f32 to vector<32x32xf32>
    %214 = arith.mulf %211, %213 : vector<32x32xf32>
    %215 = arith.addf %209, %214 : vector<32x32xf32>
    %216 = vector.extract_strided_slice %18 {offsets = [2, 0, 0], sizes = [1, 32, 32], strides = [1, 1, 1]} : vector<4x32x32xf32> to vector<1x32x32xf32>
    %217 = vector.shape_cast %216 : vector<1x32x32xf32> to vector<32x32xf32>
    %c26 = arith.constant 26 : index
    %218 = memref.load %arg2[%c26] : memref<32xf32, #tpu.memory_space<smem>>
    %219 = vector.broadcast %218 : f32 to vector<32x32xf32>
    %220 = arith.mulf %217, %219 : vector<32x32xf32>
    %221 = arith.addf %215, %220 : vector<32x32xf32>
    %222 = vector.extract_strided_slice %18 {offsets = [3, 0, 0], sizes = [1, 32, 32], strides = [1, 1, 1]} : vector<4x32x32xf32> to vector<1x32x32xf32>
    %223 = vector.shape_cast %222 : vector<1x32x32xf32> to vector<32x32xf32>
    %c27 = arith.constant 27 : index
    %224 = memref.load %arg2[%c27] : memref<32xf32, #tpu.memory_space<smem>>
    %225 = vector.broadcast %224 : f32 to vector<32x32xf32>
    %226 = arith.mulf %223, %225 : vector<32x32xf32>
    %227 = arith.addf %221, %226 : vector<32x32xf32>
    %c6_39 = arith.constant 6 : index
    %228 = memref.load %arg3[%c6_39] : memref<8xf32, #tpu.memory_space<smem>>
    %229 = vector.broadcast %228 : f32 to vector<32x32xf32>
    %230 = arith.addf %227, %229 : vector<32x32xf32>
    %cst_40 = arith.constant 0.000000e+00 : f32
    %231 = vector.broadcast %cst_40 : f32 to vector<32x32xf32>
    %232 = arith.maximumf %230, %231 : vector<32x32xf32>
    %c0_41 = arith.constant 0 : index
    %c6_42 = arith.constant 6 : index
    %c0_43 = arith.constant 0 : index
    %c0_44 = arith.constant 0 : index
    %233 = vector.load %arg4[%c0_41, %c6_42, %c0_43, %c0_44] : memref<1x8x32x32xf32, #tpu.memory_space<vmem>>, vector<1x1x32x32xf32>
    %234 = vector.shape_cast %233 : vector<1x1x32x32xf32> to vector<32x32xf32>
    %235 = vector.shape_cast %232 : vector<32x32xf32> to vector<1x1x32x32xf32>
    tpu.vector_store %arg4[%c0_41, %c6_42, %c0_43, %c0_44], %235 {strides = array<i32>} : memref<1x8x32x32xf32, #tpu.memory_space<vmem>>, vector<1x1x32x32xf32>,
    %236 = vector.extract_strided_slice %18 {offsets = [0, 0, 0], sizes = [1, 32, 32], strides = [1, 1, 1]} : vector<4x32x32xf32> to vector<1x32x32xf32>
    %237 = vector.shape_cast %236 : vector<1x32x32xf32> to vector<32x32xf32>
    %c28 = arith.constant 28 : index
    %238 = memref.load %arg2[%c28] : memref<32xf32, #tpu.memory_space<smem>>
    %239 = vector.broadcast %238 : f32 to vector<32x32xf32>
    %240 = arith.mulf %237, %239 : vector<32x32xf32>
    %241 = vector.extract_strided_slice %18 {offsets = [1, 0, 0], sizes = [1, 32, 32], strides = [1, 1, 1]} : vector<4x32x32xf32> to vector<1x32x32xf32>
    %242 = vector.shape_cast %241 : vector<1x32x32xf32> to vector<32x32xf32>
    %c29 = arith.constant 29 : index
    %243 = memref.load %arg2[%c29] : memref<32xf32, #tpu.memory_space<smem>>
    %244 = vector.broadcast %243 : f32 to vector<32x32xf32>
    %245 = arith.mulf %242, %244 : vector<32x32xf32>
    %246 = arith.addf %240, %245 : vector<32x32xf32>
    %247 = vector.extract_strided_slice %18 {offsets = [2, 0, 0], sizes = [1, 32, 32], strides = [1, 1, 1]} : vector<4x32x32xf32> to vector<1x32x32xf32>
    %248 = vector.shape_cast %247 : vector<1x32x32xf32> to vector<32x32xf32>
    %c30 = arith.constant 30 : index
    %249 = memref.load %arg2[%c30] : memref<32xf32, #tpu.memory_space<smem>>
    %250 = vector.broadcast %249 : f32 to vector<32x32xf32>
    %251 = arith.mulf %248, %250 : vector<32x32xf32>
    %252 = arith.addf %246, %251 : vector<32x32xf32>
    %253 = vector.extract_strided_slice %18 {offsets = [3, 0, 0], sizes = [1, 32, 32], strides = [1, 1, 1]} : vector<4x32x32xf32> to vector<1x32x32xf32>
    %254 = vector.shape_cast %253 : vector<1x32x32xf32> to vector<32x32xf32>
    %c31 = arith.constant 31 : index
    %255 = memref.load %arg2[%c31] : memref<32xf32, #tpu.memory_space<smem>>
    %256 = vector.broadcast %255 : f32 to vector<32x32xf32>
    %257 = arith.mulf %254, %256 : vector<32x32xf32>
    %258 = arith.addf %252, %257 : vector<32x32xf32>
    %c7_45 = arith.constant 7 : index
    %259 = memref.load %arg3[%c7_45] : memref<8xf32, #tpu.memory_space<smem>>
    %260 = vector.broadcast %259 : f32 to vector<32x32xf32>
    %261 = arith.addf %258, %260 : vector<32x32xf32>
    %cst_46 = arith.constant 0.000000e+00 : f32
    %262 = vector.broadcast %cst_46 : f32 to vector<32x32xf32>
    %263 = arith.maximumf %261, %262 : vector<32x32xf32>
    %c0_47 = arith.constant 0 : index
    %c7_48 = arith.constant 7 : index
    %c0_49 = arith.constant 0 : index
    %c0_50 = arith.constant 0 : index
    %264 = vector.load %arg4[%c0_47, %c7_48, %c0_49, %c0_50] : memref<1x8x32x32xf32, #tpu.memory_space<vmem>>, vector<1x1x32x32xf32>
    %265 = vector.shape_cast %264 : vector<1x1x32x32xf32> to vector<32x32xf32>
    %266 = vector.shape_cast %263 : vector<32x32xf32> to vector<1x1x32x32xf32>
    tpu.vector_store %arg4[%c0_47, %c7_48, %c0_49, %c0_50], %266 {strides = array<i32>} : memref<1x8x32x32xf32, #tpu.memory_space<vmem>>, vector<1x1x32x32xf32>,
    return
  }
  func.func @transform_0(%arg0: i32) -> (i32, i32, i32, i32) {
    %c0_i32 = arith.constant 0 : i32
    %c0_i32_0 = arith.constant 0 : i32
    %c0_i32_1 = arith.constant 0 : i32
    %c0_i32_2 = arith.constant 0 : i32
    return %arg0, %c0_i32, %c0_i32_0, %c0_i32_1 : i32, i32, i32, i32
  }
  func.func @transform_1(%arg0: i32) -> i32 {
    %c0_i32 = arith.constant 0 : i32
    %c0_i32_0 = arith.constant 0 : i32
    return %c0_i32 : i32
  }
  func.func @transform_2(%arg0: i32) -> i32 {
    %c0_i32 = arith.constant 0 : i32
    %c0_i32_0 = arith.constant 0 : i32
    return %c0_i32 : i32
  }
  func.func @transform_3(%arg0: i32) -> (i32, i32, i32, i32) {
    %c0_i32 = arith.constant 0 : i32
    %c0_i32_0 = arith.constant 0 : i32
    %c0_i32_1 = arith.constant 0 : i32
    %c0_i32_2 = arith.constant 0 : i32
    return %arg0, %c0_i32, %c0_i32_0, %c0_i32_1 : i32, i32, i32, i32
  }
}

</mosaic_0001>

<bundles_post_ra>
// kernel: mul.0
= control target key start
LH: loop header
LB: loop body
LE: loop exit
PB: predicated region body
PF: predicated region fallthrough
CT: control target
= control target key end

     0   :  { %s34_s0 = inlined_call_operand.vmem [shape: f32[32], index: 0, kind: input, shape index: {}]   ;;  %s35_s1 = inlined_call_operand.vmem [shape: f32[32], index: 1, kind: input, shape index: {}]   ;;  %s36_s2 = inlined_call_operand.vmem [shape: f32[32], index: 2, kind: output, shape index: {}]  }
   0x1   :  { %v3_v0 = vld [vmem:[%s34_s0] sm:$0x1] }
   0x2   :  { %v4_v1 = vld [vmem:[%s35_s1] sm:$0x1] }
   0x3   :  { %v7_v2 = vmul.f32 %v4_v1, %v3_v0 }
   0x5   :  { %9 = vst [vmem:[%s36_s2] sm:$0x1] %v7_v2 }

// kernel: deconv_unit_pool_forward.1
= control target key start
LH: loop header
LB: loop body
LE: loop exit
PB: predicated region body
PF: predicated region fallthrough
CT: control target
= control target key end

     0   :  { %s2907_s0 = inlined_call_operand.vmem [shape: f32[2,4,34,34], index: 0, kind: input, shape index: {}]   ;;  %s2908_s1 = inlined_call_operand.vmem [shape: f32[32], index: 1, kind: input, shape index: {}]   ;;  %s2909_s2 = inlined_call_operand.vmem [shape: f32[8], index: 2, kind: input, shape index: {}]   ;;  %s2910_s3 = inlined_call_operand.hbm [shape: f32[2,8,32,32], index: 3, kind: output, shape index: {}]  }
   0x1   :  { %2943 = sst [smem:[#allocation57_spill]] %s2907_s0 }
   0x2   :  { %2944 = sst [smem:[#allocation58_spill]] %s2908_s1 }
   0x3   :  { %2945 = sst [smem:[#allocation59_spill]] %s2909_s2 }
   0x4   :  { %8 = vsyncpa [#allocation4], 0 }
   0x5   :  { %9 = vsyncpa [#allocation6], 0 }
   0x6   :  { %10 = vsyncpa [#allocation3], 0 }
   0x7   :  { %12 = vsyncpa [#allocation3 + $0x1], 0  ;;  %s1541_s12 = smov 0   ;;  %s1543_s13 = smov 0  }
   0x8   :  { %s1545_s14 = smov 0   ;;  %s1547_s15 = smov 0  }
   0x9 LB: > { %2946 = sst [smem:[#allocation11_spill]] %s1509_s14  ;;  %s1562_s16 = sadd.s32 4294967295, %s1513_s15   ;;  %s1513_s15 = sphi %s1547_s15, %s3065_s15   ;;  %s1509_s14 = sphi %s1545_s14, %s3067_s14   ;;  %s1505_s13 = sphi %s1543_s13, %s3069_s13   ;;  %s1501_s12 = sphi %s1541_s12, %s3068_s12  }
   0xa   : > { %s1266_s17 = sadd.s32 4294967294, %s1513_s15   ;;  %s1566_s18 = sadd.s32 1, %s1513_s15  }
   0xb   : > { %2947 = sst [smem:[#allocation12_spill]] %s1566_s18  ;;  %s93_s19 = sadd.s32 1, %s1509_s14 }
   0xc   : > { %s90_s20 = ssub.s32 %s1513_s15, %s1566_s18  ;;  %p103_p0 = scmp.ne.s32.totalorder %s1509_s14, %s1505_s13 }
   0xd   : > { %p91_p1 = scmp.eq.s32.totalorder %s90_s20, 0  ;;  %p104_p2 = scmp.eq.s32.totalorder %s1562_s16, 1 }
   0xe   : > { %p109_p3 = scmp.ne.s32.totalorder %s1505_s13, %s1501_s12  ;;  %p110_p4 = scmp.eq.s32.totalorder %s1266_s17, 1 }
   0xf   : > { %s1577_s21 = scalar_select %p91_p1, %s1509_s14, %s93_s19  }
  0x10   : > { %p1579_p5 = por %p104_p2, %p103_p0  ;;  %p1583_p6 = por %p110_p4, %p109_p3 }
  0x11   : > { %2948 = sst [smem:[#allocation13_spill]] %s1577_s21  ;;  %p1267_p7 = scmp.ge.s32.totalorder %s1513_s15, 1 }
  0x12   : > { %p117_p8 = scmp.lt.s32.totalorder %s1513_s15, 3  ;;  %p1370_p9 = scmp.eq.s32.totalorder %s1562_s16, 0 }
  0x13   : > { %s2951_s1 = sld [smem:[#allocation58_spill]]  ;;  %s1515_s30 = smov [#allocation2]  }
  0x14   : > { %p118_p10 = pnand %p1267_p7, %p117_p8  ;;  %s2952_s2 = sld [smem:[#allocation59_spill]] }
  0x15   : > { %s1516_s4 = smov [#allocation5]  }
  0x16   : > { %p1359_p11 = pneg %p118_p10 }
  0x18   : > { %p1360_p12 = pnand %p1370_p9, %p1359_p11  ;;  %160 = sbr.rel (%p118_p10) target bundleno = 461 (0x1cd), region = 32 }
  0x19   : > { %s129_s26 = sshll.u32 %s2951_s1, 4  ;;  %s130_s26 = int_to_ptr.vmem [resolvable:$true] %s129_s26 }
  0x1a   : > { %s139_s29 = sshll.u32 %s2952_s2, 4  ;;  %s140_s29 = int_to_ptr.vmem [resolvable:$true] %s139_s29 }
  0x1b   : > { %1362 = dma.vmem_to_smem (!%p1360_p12), %s130_s26, 16, %s1515_s30, [#allocation4]  }
  0x1c   : > { %1365 = dma.vmem_to_smem (!%p1360_p12), %s140_s29, 16, %s1516_s4, [#allocation6]  }
  0x1d   : > { %1488 = dma.done.wait (%p1370_p9), [#allocation4], 16  }
  0x1e   : > { %1490 = vsyncadd (%p1370_p9), [#allocation4], 4294967280 }
  0x1f   : > { %1492 = dma.done.wait (%p1370_p9), [#allocation6], 16  }
  0x20   : > { %1494 = vsyncadd (%p1370_p9), [#allocation6], 4294967280 }
  0x21   : > { %172 = sfence }
  0x22   : > { %p191_p13 = scmp.lt.s32.totalorder %s1562_s16, 1  ;;  %s2953_s0 = sld [smem:[#allocation57_spill]]  ;;  %vm364_vm0 = vcmask 1046528   ;;  %vm561_vm1 = vcmask 1045504   ;;  %vm804_vm2 = vcmask 261120  }
  0x23   : > { %s1517_s10 = smov 127   ;;  %s1518_s11 = smov 126  }
  0x24   : > { %s192_s5 = scalar_select %p191_p13, %s1562_s16, 1 }
  0x25   : > { %s2170_s17 = sld [smem:[#allocation2]] }
  0x26   : > { %s1348_s6 = smul.u32 160, %s192_s5  ;;  %s2172_s19 = sld [smem:[#allocation2 + $0x4]] }
  0x27   : > { %s2180_s20 = sld [smem:[#allocation2 + $0x8]] }
  0x28   : > { %s1611_s9 = scalar_lea.vmem %s2953_s0, %s1348_s6  ;;  %s2186_s24 = sld [smem:[#allocation2 + $0xc]] }
  0x29   : > { %v1614_v0 = vld [vmem:[%s1611_s9 + $0x28] sm:$0xff]  ;;  %v1617_v1 = vld [vmem:[%s1611_s9 + $0x10] sm:$0xff]  ;;  %v1620_v2 = vld [vmem:[%s1611_s9] sm:$0xff]  ;;  %s2192_s25 = sld [smem:[#allocation2 + $0x10]] }
  0x2a   : > { %240 = vrot.lane.b32.xlu2 %v1614_v0, %s1517_s10  ;;  %236 = vrot.lane.b32.xlu1 %v1617_v1, %s1517_s10  ;;  %v1629_v3 = vld [vmem:[%s1611_s9 + $0x30] sm:$0xff]  ;;  %v1632_v4 = vld [vmem:[%s1611_s9 + $0x18] sm:$0xff]  ;;  %v365_v16 = vrot.slane %v1620_v2, 1  ;;  %v368_v20 = vrot.slane %v1617_v1, 1  ;;  %v374_v30 = vrot.slane %v1614_v0, 1  ;;  %s2195_s26 = sld [smem:[#allocation2 + $0x14]] }
  0x2b   : > { %232 = vrot.lane.b32.xlu0 %v1620_v2, %s1517_s10  ;;  %v1635_v5 = vld [vmem:[%s1611_s9 + $0x8] sm:$0xff]  ;;  %v1644_v6 = vld [vmem:[%s1611_s9 + $0x50] sm:$0xff]  ;;  %v1647_v7 = vld [vmem:[%s1611_s9 + $0x40] sm:$0xff]  ;;  %v370_v21 = vrot.slane %v1632_v4, 1  ;;  %v375_v26 = vrot.slane %v1629_v3, 1  ;;  %s2197_s27 = sld [smem:[#allocation2 + $0x18]] }
  0x2c   : > { %v1650_v8 = vld [vmem:[%s1611_s9 + $0x38] sm:$0xff]  ;;  %v1659_v9 = vld [vmem:[%s1611_s9 + $0x68] sm:$0xff]  ;;  %v1662_v10 = vld [vmem:[%s1611_s9 + $0x60] sm:$0xff]  ;;  %v366_v17 = vrot.slane %v1635_v5, 1  ;;  %v379_v28 = vrot.slane %v1647_v7, 1  ;;  %v383_v35 = vrot.slane %v1644_v6, 1 }
  0x2d   : > { %v1665_v11 = vld [vmem:[%s1611_s9 + $0x58] sm:$0xff]  ;;  %v1674_v12 = vld [vmem:[%s1611_s9 + $0x88] sm:$0xff]  ;;  %v1677_v13 = vld [vmem:[%s1611_s9 + $0x80] sm:$0xff]  ;;  %v1739_v23 = vsel %vm364_vm0, %v368_v20, %v370_v21  ;;  %v377_v27 = vrot.slane %v1650_v8, 1  ;;  %v1766_v33 = vsel %vm364_vm0, %v374_v30, %v375_v26  ;;  %v386_v37 = vrot.slane %v1662_v10, 1  ;;  %s2199_s28 = sld [smem:[#allocation2 + $0x1c]] }
  0x2e   : > { %v1680_v14 = vld [vmem:[%s1611_s9 + $0x78] sm:$0xff]  ;;  %v1689_v15 = vld [vmem:[%s1611_s9 + $0x90] sm:$0xff]  ;;  %v1724_v18 = vsel %vm364_vm0, %v365_v16, %v366_v17  ;;  %v1727_v19 = vld [vmem:[%s1611_s9 + $0x20] sm:$0x3]  ;;  %v1745_v25 = vsel %vm364_vm0, %v366_v17, %v368_v20  ;;  %v384_v36 = vrot.slane %v1665_v11, 1  ;;  %v388_v44 = vrot.slane %v1659_v9, 1 }
  0x2f   : > { %v372_v22 = vrot.slane %v1727_v19, 1  ;;  %v1760_v31 = vsel %vm364_vm0, %v375_v26, %v377_v27  ;;  %v1763_v32 = vsel %vm364_vm0, %v377_v27, %v379_v28  ;;  %v1769_v34 = vld [vmem:[%s1611_s9 + $0x48] sm:$0x3]  ;;  %v1793_v43 = vld [vmem:[%s1611_s9 + $0x70] sm:$0x3]  ;;  %v392_v46 = vrot.slane %v1680_v14, 1 }
  0x30   : > { %v381_v39 = vrot.slane %v1769_v34, 1  ;;  %v1784_v40 = vsel %vm364_vm0, %v383_v35, %v384_v36  ;;  %v1787_v41 = vsel %vm364_vm0, %v384_v36, %v386_v37  ;;  %v390_v45 = vrot.slane %v1793_v43, 1  ;;  %v1817_v52 = vld [vmem:[%s1611_s9 + $0x98] sm:$0x3]  ;;  %s2201_s29 = sld [smem:[#allocation2 + $0x1]] }
  0x31   : > { %v1742_v24 = vsel %vm364_vm0, %v370_v21, %v372_v22  ;;  %v393_v47 = vrot.slane %v1677_v13, 1  ;;  %v1814_v51 = vsel %vm364_vm0, %v386_v37, %v388_v44  ;;  %v395_v53 = vrot.slane %v1674_v12, 1  ;;  %s2203_s30 = sld [smem:[#allocation2 + $0x5]] }
  0x32   : > { %242 = vrot.lane.b32.xlu2 %v1629_v3, %s1517_s10  ;;  %238 = vrot.lane.b32.xlu1 %v1632_v4, %s1517_s10  ;;  %v1790_v42 = vsel %vm364_vm0, %v379_v28, %v381_v39  ;;  %v1808_v49 = vsel %vm364_vm0, %v388_v44, %v390_v45  ;;  %v397_v54 = vrot.slane %v1689_v15, 1  ;;  %v399_v55 = vrot.slane %v1817_v52, 1  ;;  %s2208_s4 = sld [smem:[#allocation2 + $0x9]] }
  0x33   : > { %234 = vrot.lane.b32.xlu0 %v1635_v5, %s1517_s10  ;;  %v1811_v50 = vsel %vm364_vm0, %v392_v46, %v393_v47  ;;  %v1839_v61 = vsel %vm364_vm0, %v393_v47, %v395_v53  ;;  %s2212_s5 = sld [smem:[#allocation2 + $0xd]] }
  0x34   : > { %v1833_v59 = vsel %vm364_vm0, %v395_v53, %v397_v54  ;;  %v1836_v60 = vsel %vm364_vm0, %v397_v54, %v399_v55  ;;  %s2216_s6 = sld [smem:[#allocation2 + $0x11]] }
  0x35   : > { %s2219_s7 = sld [smem:[#allocation2 + $0x15]] }
  0x36   : > { %s2221_s8 = sld [smem:[#allocation2 + $0x19]] }
  0x37   : > { %s2223_s9 = sld [smem:[#allocation2 + $0x1d]] }
  0x38   : > { %s2232_s0 = sld [smem:[#allocation2 + $0xa]] }
  0x39   : > { %s2236_s1 = sld [smem:[#allocation2 + $0xe]] }
  0x3a   : > { %248 = vrot.lane.b32.xlu2 %v1644_v6, %s1517_s10  ;;  %246 = vrot.lane.b32.xlu1 %v1647_v7, %s1517_s10  ;;  %s2242_s2 = sld [smem:[#allocation2 + $0x12]] }
  0x3b   : > { %244 = vrot.lane.b32.xlu0 %v1650_v8, %s1517_s10  ;;  %s2244_s21 = sld [smem:[#allocation2 + $0x16]] }
  0x3c   : > { %s2252_s14 = sld [smem:[#allocation2 + $0x1a]] }
  0x3d   : > { %s2260_s18 = sld [smem:[#allocation2 + $0x1e]] }
  0x42   : > { %254 = vrot.lane.b32.xlu2 %v1659_v9, %s1517_s10  ;;  %252 = vrot.lane.b32.xlu1 %v1662_v10, %s1517_s10 }
  0x43   : > { %250 = vrot.lane.b32.xlu0 %v1665_v11, %s1517_s10 }
  0x4a   : > { %260 = vrot.lane.b32.xlu2 %v1674_v12, %s1517_s10  ;;  %258 = vrot.lane.b32.xlu1 %v1677_v13, %s1517_s10 }
  0x4b   : > { %256 = vrot.lane.b32.xlu0 %v1680_v14, %s1517_s10 }
  0x52   : > { %298 = vrot.lane.b32.xlu2 %v1635_v5, %s1518_s11  ;;  %296 = vrot.lane.b32.xlu1 %v1620_v2, %s1518_s11 }
  0x53   : > { %262 = vrot.lane.b32.xlu0 %v1689_v15, %s1517_s10 }
  0x5a   : > { %304 = vrot.lane.b32.xlu2 %v1614_v0, %s1518_s11  ;;  %302 = vrot.lane.b32.xlu1 %v1632_v4, %s1518_s11 }
  0x5b   : > { %300 = vrot.lane.b32.xlu0 %v1617_v1, %s1518_s11 }
  0x62   : > { %310 = vrot.lane.b32.xlu2 %v1647_v7, %s1518_s11  ;;  %308 = vrot.lane.b32.xlu1 %v1650_v8, %s1518_s11 }
  0x63   : > { %306 = vrot.lane.b32.xlu0 %v1629_v3, %s1518_s11 }
  0x6a   : > { %316 = vrot.lane.b32.xlu2 %v1662_v10, %s1518_s11  ;;  %314 = vrot.lane.b32.xlu1 %v1665_v11, %s1518_s11 }
  0x6b   : > { %312 = vrot.lane.b32.xlu0 %v1644_v6, %s1518_s11 }
  0x72   : > { %322 = vrot.lane.b32.xlu2 %v1677_v13, %s1518_s11  ;;  %320 = vrot.lane.b32.xlu1 %v1680_v14, %s1518_s11 }
  0x73   : > { %318 = vrot.lane.b32.xlu0 %v1659_v9, %s1518_s11 }
  0x7a   : > { %326 = vrot.lane.b32.xlu1 %v1689_v15, %s1518_s11  ;;  %433 = vrot.lane.b32.xlu2 %v1724_v18, %s1517_s10 }
  0x7b   : > { %324 = vrot.lane.b32.xlu0 %v1674_v12, %s1518_s11 }
  0x82   : > { %437 = vrot.lane.b32.xlu1 %v1739_v23, %s1517_s10  ;;  %439 = vrot.lane.b32.xlu2 %v1742_v24, %s1517_s10 }
  0x83   : > { %435 = vrot.lane.b32.xlu0 %v1745_v25, %s1517_s10 }
  0x84   : > { %v1756_v29 = vpop.permute.xlu2 %240 }
  0x85   : > { %v284_v28 = vmax.f32 %v1614_v0, %v1756_v29 }
  0x8a   : > { %443 = vrot.lane.b32.xlu1 %v1760_v31, %s1517_s10  ;;  %445 = vrot.lane.b32.xlu2 %v1763_v32, %s1517_s10 }
  0x8b   : > { %441 = vrot.lane.b32.xlu0 %v1766_v33, %s1517_s10 }
  0x8c   : > { %v1780_v38 = vpop.permute.xlu2 %242 }
  0x92   : > { %449 = vrot.lane.b32.xlu1 %v1784_v40, %s1517_s10  ;;  %451 = vrot.lane.b32.xlu2 %v1787_v41, %s1517_s10 }
  0x93   : > { %447 = vrot.lane.b32.xlu0 %v1790_v42, %s1517_s10 }
  0x94   : > { %v1805_v48 = vpop.permute.xlu2 %248 }
  0x9a   : > { %455 = vrot.lane.b32.xlu1 %v1808_v49, %s1517_s10  ;;  %457 = vrot.lane.b32.xlu2 %v1811_v50, %s1517_s10 }
  0x9b   : > { %453 = vrot.lane.b32.xlu0 %v1814_v51, %s1517_s10 }
  0x9c   : > { %v1828_v56 = vpop.permute.xlu2 %254  ;;  %v1830_v57 = vpop.permute.xlu1 %236 }
  0x9d   : > { %v233_v58 = vpop.permute.xlu0 %232 }
  0x9e   : > { %v280_v54 = vmax.f32 %v1620_v2, %v233_v58 }
  0xa2   : > { %461 = vrot.lane.b32.xlu1 %v1833_v59, %s1517_s10  ;;  %463 = vrot.lane.b32.xlu2 %v1836_v60, %s1517_s10 }
  0xa3   : > { %459 = vrot.lane.b32.xlu0 %v1839_v61, %s1517_s10 }
  0xa4   : > { %v1847_v62 = vpop.permute.xlu2 %260  ;;  %v239_v63 = vpop.permute.xlu1 %238 }
  0xa5   : > { %v235_v16 = vpop.permute.xlu0 %234 }
  0xa6   : > { %v281_v17 = vmax.f32 %v1635_v5, %v235_v16 }
  0xaa   : > { %499 = vrot.lane.b32.xlu1 %v1745_v25, %s1518_s11  ;;  %501 = vrot.lane.b32.xlu2 %v1739_v23, %s1518_s11 }
  0xab   : > { %497 = vrot.lane.b32.xlu0 %v1724_v18, %s1518_s11 }
  0xac   : > { %v247_v20 = vpop.permute.xlu1 %246  ;;  %v299_v21 = vpop.permute.xlu2 %298 }
  0xad   : > { %v1856_v22 = vmax.f32 %v281_v17, %v299_v21  ;;  %v1858_v26 = vpop.permute.xlu0 %244  ;;  %v287_v29 = vmax.f32 %v1647_v7, %v247_v20 }
  0xb2   : > { %505 = vrot.lane.b32.xlu1 %v1766_v33, %s1518_s11  ;;  %507 = vrot.lane.b32.xlu2 %v1760_v31, %s1518_s11 }
  0xb3   : > { %503 = vrot.lane.b32.xlu0 %v1742_v24, %s1518_s11 }
  0xb4   : > { %v253_v30 = vpop.permute.xlu1 %252  ;;  %v305_v35 = vpop.permute.xlu2 %304 }
  0xb5   : > { %v1870_v36 = vmax.f32 %v284_v28, %v305_v35  ;;  %v1872_v37 = vpop.permute.xlu0 %250  ;;  %v290_v55 = vmax.f32 %v1662_v10, %v253_v30  ;;  %v562_v30 = vrot.slane %v1620_v2, 2 }
  0xba   : > { %511 = vrot.lane.b32.xlu1 %v1790_v42, %s1518_s11  ;;  %513 = vrot.lane.b32.xlu2 %v1784_v40, %s1518_s11 }
  0xbb   : > { %509 = vrot.lane.b32.xlu0 %v1763_v32, %s1518_s11 }
  0xbc   : > { %v259_v44 = vpop.permute.xlu1 %258  ;;  %v311_v45 = vpop.permute.xlu2 %310 }
  0xbd   : > { %v1883_v46 = vmax.f32 %v287_v29, %v311_v45  ;;  %v1885_v47 = vpop.permute.xlu0 %256  ;;  %v283_v29 = vmax.f32 %v1632_v4, %v239_v63  ;;  %v293_v58 = vmax.f32 %v1677_v13, %v259_v44  ;;  %v563_v45 = vrot.slane %v1635_v5, 2 }
  0xbe   : > { %v282_v63 = vmax.f32 %v1617_v1, %v1830_v57  ;;  %v567_v57 = vrot.slane %v1632_v4, 2 }
  0xbf   : > { %v1921_v39 = vsel %vm561_vm1, %v562_v30, %v563_v45  ;;  %v572_v30 = vrot.slane %v1629_v3, 2 }
  0xc2   : > { %517 = vrot.lane.b32.xlu1 %v1814_v51, %s1518_s11  ;;  %519 = vrot.lane.b32.xlu2 %v1808_v49, %s1518_s11 }
  0xc3   : > { %515 = vrot.lane.b32.xlu0 %v1787_v41, %s1518_s11 }
  0xc4   : > { %v317_v16 = vpop.permute.xlu2 %316  ;;  %v297_v17 = vpop.permute.xlu1 %296 }
  0xc5   : > { %v1897_v20 = vmax.f32 %v290_v55, %v317_v16  ;;  %v344_v21 = vmax.f32 %v280_v54, %v297_v17  ;;  %v1899_v28 = vpop.permute.xlu0 %262  ;;  %v565_v54 = vrot.slane %v1617_v1, 2  ;;  %v286_v1 = vmax.f32 %v1650_v8, %v1858_v26 }
  0xc6   : > { %v285_v26 = vmax.f32 %v1629_v3, %v1780_v38  ;;  %v289_v3 = vmax.f32 %v1665_v11, %v1872_v37  ;;  %v574_v38 = vrot.slane %v1650_v8, 2  ;;  %v288_v37 = vmax.f32 %v1644_v6, %v1805_v48 }
  0xc7   : > { %v1924_v2 = vsel %vm561_vm1, %v563_v45, %v565_v54  ;;  %v581_v48 = vrot.slane %v1665_v11, 2 }
  0xca   : > { %523 = vrot.lane.b32.xlu1 %v1839_v61, %s1518_s11  ;;  %525 = vrot.lane.b32.xlu2 %v1833_v59, %s1518_s11 }
  0xcb   : > { %521 = vrot.lane.b32.xlu0 %v1811_v50, %s1518_s11 }
  0xcc   : > { %v323_v55 = vpop.permute.xlu2 %322  ;;  %v303_v16 = vpop.permute.xlu1 %302 }
  0xcd   : > { %v1916_v17 = vmax.f32 %v293_v58, %v323_v55  ;;  %v347_v35 = vmax.f32 %v283_v29, %v303_v16  ;;  %v301_v53 = vpop.permute.xlu0 %300  ;;  %v569_v29 = vrot.slane %v1727_v19, 2  ;;  %v571_v58 = vrot.slane %v1614_v0, 2 }
  0xce   : > { %v1918_v44 = vmax.f32 %v282_v63, %v301_v53  ;;  %v417_v53 = vmax.f32 %v344_v21, %v1724_v18  ;;  %v1954_v0 = vsel %vm561_vm1, %v565_v54, %v567_v57  ;;  %v576_v21 = vrot.slane %v1647_v7, 2 }
  0xcf   : > { %v1948_v27 = vsel %vm561_vm1, %v567_v57, %v569_v29  ;;  %v1951_v18 = vsel %vm561_vm1, %v571_v58, %v572_v30  ;;  %v420_v19 = vmax.f32 %v347_v35, %v1742_v24  ;;  %v578_v54 = vrot.slane %v1769_v34, 2 }
  0xd0   : > { %v1981_v7 = vsel %vm561_vm1, %v572_v30, %v574_v38  ;;  %v292_v24 = vmax.f32 %v1680_v14, %v1885_v47  ;;  %v583_v35 = vrot.slane %v1662_v10, 2  ;;  %v585_v30 = vrot.slane %v1659_v9, 2 }
  0xd1   : > { %v1978_v8 = vsel %vm561_vm1, %v576_v21, %v578_v54  ;;  %v291_v47 = vmax.f32 %v1659_v9, %v1828_v56  ;;  %v295_v9 = vmax.f32 %v1689_v15, %v1899_v28  ;;  %v589_v56 = vrot.slane %v1680_v14, 2 }
  0xd2   : > { %630 = vrot.lane.b32.xlu1 %v1921_v39, %s1517_s10  ;;  %632 = vrot.lane.b32.xlu2 %v1924_v2, %s1517_s10  ;;  %v2006_v10 = vsel %vm561_vm1, %v583_v35, %v585_v30  ;;  %v294_v28 = vmax.f32 %v1674_v12, %v1847_v62 }
  0xd3   : > { %527 = vrot.lane.b32.xlu0 %v1836_v60, %s1518_s11 }
  0xd4   : > { %v309_v45 = vpop.permute.xlu1 %308  ;;  %v434_v63 = vpop.permute.xlu2 %433 }
  0xd5   : > { %v350_v55 = vmax.f32 %v286_v1, %v309_v45  ;;  %v307_v16 = vpop.permute.xlu0 %306  ;;  %v1943_v5 = vmax.f32 %v417_v53, %v434_v63  ;;  %v1975_v45 = vsel %vm561_vm1, %v574_v38, %v576_v21 }
  0xd6   : > { %v1945_v4 = vmax.f32 %v285_v26, %v307_v16 }
  0xd7   : > { %v423_v34 = vmax.f32 %v350_v55, %v1763_v32  ;;  %v2003_v32 = vsel %vm561_vm1, %v581_v48, %v583_v35  ;;  %v590_v55 = vrot.slane %v1677_v13, 2 }
  0xda   : > { %636 = vrot.lane.b32.xlu1 %v1948_v27, %s1517_s10  ;;  %638 = vrot.lane.b32.xlu2 %v1951_v18, %s1517_s10 }
  0xdb   : > { %634 = vrot.lane.b32.xlu0 %v1954_v0, %s1517_s10 }
  0xdc   : > { %v315_v1 = vpop.permute.xlu1 %314  ;;  %v440_v57 = vpop.permute.xlu2 %439 }
  0xdd   : > { %v353_v53 = vmax.f32 %v289_v3, %v315_v1  ;;  %v313_v29 = vpop.permute.xlu0 %312  ;;  %v1970_v58 = vmax.f32 %v420_v19, %v440_v57  ;;  %v580_v3 = vrot.slane %v1644_v6, 2 }
  0xde   : > { %v1972_v26 = vmax.f32 %v288_v37, %v313_v29  ;;  %v592_v37 = vrot.slane %v1674_v12, 2  ;;  %v587_v29 = vrot.slane %v1793_v43, 2  ;;  %v419_v12 = vmax.f32 %v1918_v44, %v1739_v23 }
  0xdf   : > { %v2009_v11 = vsel %vm561_vm1, %v580_v3, %v581_v48  ;;  %v426_v6 = vmax.f32 %v353_v53, %v1787_v41  ;;  %v2029_v41 = vsel %vm561_vm1, %v589_v56, %v590_v55  ;;  %v422_v23 = vmax.f32 %v1945_v4, %v1760_v31 }
  0xe0   : > { %v2032_v14 = vsel %vm561_vm1, %v590_v55, %v592_v37  ;;  %v2035_v13 = vsel %vm561_vm1, %v585_v30, %v587_v29  ;;  %v425_v31 = vmax.f32 %v1972_v26, %v1784_v40 }
  0xe2   : > { %642 = vrot.lane.b32.xlu1 %v1975_v45, %s1517_s10  ;;  %644 = vrot.lane.b32.xlu2 %v1978_v8, %s1517_s10 }
  0xe3   : > { %640 = vrot.lane.b32.xlu0 %v1981_v7, %s1517_s10 }
  0xe4   : > { %v321_v63 = vpop.permute.xlu1 %320  ;;  %v446_v16 = vpop.permute.xlu2 %445 }
  0xe5   : > { %v356_v19 = vmax.f32 %v292_v24, %v321_v63  ;;  %v319_v38 = vpop.permute.xlu0 %318  ;;  %v1998_v21 = vmax.f32 %v423_v34, %v446_v16  ;;  %v2954_v16 = vmax.f32 %v1856_v22, %v1745_v25 }
  0xe6   : > { %v2000_v54 = vmax.f32 %v291_v47, %v319_v38 }
  0xe7   : > { %v429_v43 = vmax.f32 %v356_v19, %v1811_v50 }
  0xea   : > { %648 = vrot.lane.b32.xlu1 %v2003_v32, %s1517_s10  ;;  %650 = vrot.lane.b32.xlu2 %v2006_v10, %s1517_s10 }
  0xeb   : > { %646 = vrot.lane.b32.xlu0 %v2009_v11, %s1517_s10 }
  0xec   : > { %v327_v1 = vpop.permute.xlu1 %326  ;;  %v452_v57 = vpop.permute.xlu2 %451 }
  0xed   : > { %v359_v24 = vmax.f32 %v295_v9, %v327_v1  ;;  %v325_v34 = vpop.permute.xlu0 %324  ;;  %v2026_v48 = vmax.f32 %v426_v6, %v452_v57  ;;  %v2955_v9 = vmax.f32 %v1870_v36, %v1766_v33 }
  0xee   : > { %v358_v35 = vmax.f32 %v294_v28, %v325_v34  ;;  %v2956_v28 = vmax.f32 %v1883_v46, %v1790_v42  ;;  %v596_v46 = vrot.slane %v1817_v52, 2 }
  0xef   : > { %v432_v50 = vmax.f32 %v359_v24, %v1836_v60  ;;  %v594_v60 = vrot.slane %v1689_v15, 2  ;;  %v428_v15 = vmax.f32 %v2000_v54, %v1808_v49 }
  0xf0   : > { %v431_v49 = vmax.f32 %v358_v35, %v1833_v59 }
  0xf1   : > { %v595_v57 = vsel %vm561_vm1, %v592_v37, %v594_v60 }
  0xf2   : > { %654 = vrot.lane.b32.xlu1 %v2029_v41, %s1517_s10  ;;  %656 = vrot.lane.b32.xlu2 %v2032_v14, %s1517_s10 }
  0xf3   : > { %652 = vrot.lane.b32.xlu0 %v2035_v13, %s1517_s10 }
  0xf4   : > { %v438_v62 = vpop.permute.xlu1 %437  ;;  %v458_v53 = vpop.permute.xlu2 %457 }
  0xf5   : > { %v483_v47 = vmax.f32 %v419_v12, %v438_v62  ;;  %v436_v63 = vpop.permute.xlu0 %435  ;;  %v2046_v30 = vmax.f32 %v429_v43, %v458_v53  ;;  %v597_v43 = vsel %vm561_vm1, %v594_v60, %v596_v46 }
  0xf6   : > { %v2051_v3 = vmax.f32 %v2954_v16, %v436_v63 }
  0xfa   : > { %696 = vrot.lane.b32.xlu1 %v1924_v2, %s1518_s11  ;;  %698 = vrot.lane.b32.xlu2 %v1954_v0, %s1518_s11 }
  0xfb   : > { %694 = vrot.lane.b32.xlu0 %v1921_v39, %s1518_s11 }
  0xfc   : > { %v444_v44 = vpop.permute.xlu1 %443  ;;  %v464_v19 = vpop.permute.xlu2 %463 }
  0xfd   : > { %v486_v38 = vmax.f32 %v422_v23, %v444_v44  ;;  %v442_v25 = vpop.permute.xlu0 %441  ;;  %v2062_v22 = vmax.f32 %v432_v50, %v464_v19 }
  0xfe   : > { %v2067_v6 = vmax.f32 %v2955_v9, %v442_v25 }
 0x102   : > { %702 = vrot.lane.b32.xlu1 %v1951_v18, %s1518_s11  ;;  %704 = vrot.lane.b32.xlu2 %v1981_v7, %s1518_s11 }
 0x103   : > { %700 = vrot.lane.b32.xlu0 %v1948_v27, %s1518_s11 }
 0x104   : > { %v450_v4 = vpop.permute.xlu1 %449  ;;  %v502_v56 = vpop.permute.xlu2 %501 }
 0x105   : > { %v489_v55 = vmax.f32 %v425_v31, %v450_v4  ;;  %v448_v33 = vpop.permute.xlu0 %447  ;;  %v547_v36 = vmax.f32 %v483_v47, %v502_v56 }
 0x106   : > { %v2081_v1 = vmax.f32 %v2956_v28, %v448_v33 }
 0x107   : > { %v2085_v29 = vmax.f32 %v547_v36, %v1954_v0  ;;  %v2957_v0 = vmax.f32 %v1897_v20, %v1814_v51 }
 0x10a   : > { %708 = vrot.lane.b32.xlu1 %v1978_v8, %s1518_s11  ;;  %658 = vrot.lane.b32.xlu2 %v595_v57, %s1517_s10 }
 0x10b   : > { %706 = vrot.lane.b32.xlu0 %v1975_v45, %s1518_s11 }
 0x10c   : > { %v456_v40 = vpop.permute.xlu1 %455  ;;  %v508_v42 = vpop.permute.xlu2 %507 }
 0x10d   : > { %v492_v26 = vmax.f32 %v428_v15, %v456_v40  ;;  %v454_v37 = vpop.permute.xlu0 %453  ;;  %v550_v24 = vmax.f32 %v486_v38, %v508_v42 }
 0x10e   : > { %v491_v34 = vmax.f32 %v2957_v0, %v454_v37 }
 0x10f   : > { %v2099_v12 = vmax.f32 %v550_v24, %v1981_v7  ;;  %v2958_v7 = vmax.f32 %v1916_v17, %v1839_v61 }
 0x112   : > { %710 = vrot.lane.b32.xlu1 %v2009_v11, %s1518_s11  ;;  %712 = vrot.lane.b32.xlu2 %v2003_v32, %s1518_s11 }
 0x113   : > { %660 = vrot.lane.b32.xlu0 %v597_v43, %s1517_s10  ;;  %s2225_s10 = sld [smem:[#allocation2 + $0x2]] }
 0x114   : > { %v462_v52 = vpop.permute.xlu1 %461  ;;  %v514_v54 = vpop.permute.xlu2 %513 }
 0x115   : > { %v495_v62 = vmax.f32 %v431_v49, %v462_v52  ;;  %v460_v51 = vpop.permute.xlu0 %459  ;;  %v553_v20 = vmax.f32 %v489_v55, %v514_v54 }
 0x116   : > { %v494_v53 = vmax.f32 %v2958_v7, %v460_v51 }
 0x117   : > { %v2112_v47 = vmax.f32 %v553_v20, %v2009_v11 }
 0x119   : > { %2959 = vst [vmem:[#allocation14_spill] sm:$0xff] %v2112_v47 }
 0x11a   : > { %716 = vrot.lane.b32.xlu1 %v2035_v13, %s1518_s11  ;;  %718 = vrot.lane.b32.xlu2 %v2029_v41, %s1518_s11 }
 0x11b   : > { %714 = vrot.lane.b32.xlu0 %v2006_v10, %s1518_s11 }
 0x11c   : > { %v500_v59 = vpop.permute.xlu1 %499  ;;  %v520_v35 = vpop.permute.xlu2 %519 }
 0x11d   : > { %v546_v63 = vmax.f32 %v2051_v3, %v500_v59  ;;  %v2121_v16 = vpop.permute.xlu0 %497  ;;  %v556_v61 = vmax.f32 %v492_v26, %v520_v35 }
 0x11e   : > { %v545_v17 = vmax.f32 %v1943_v5, %v2121_v16  ;;  %v2274_v5 = vstv %s2172_s19  ;;  %v2279_v16 = vstv %s2180_s20  ;;  %s2316_s19 = sld [smem:[#allocation2 + $0x7]] }
 0x11f   : > { %v2126_v11 = vmax.f32 %v556_v61, %v2035_v13  ;;  %v2140_v13 = vmax.f32 %v546_v63, %v1924_v2  ;;  %s2329_s20 = sld [smem:[#allocation2 + $0xb]] }
 0x120   : > { %v2258_v63 = vmax.f32 %v545_v17, %v1921_v39  ;;  %v2282_v17 = vstv %s2186_s24  ;;  %s2342_s24 = sld [smem:[#allocation2 + $0xf]] }
 0x121   : > { %2960 = vst [vmem:[#allocation15_spill] sm:$0xff] %v2126_v11 }
 0x122   : > { %722 = vrot.lane.b32.xlu1 %v595_v57, %s1518_s11  ;;  %724 = vrot.lane.b32.xlu2 %v597_v43, %s1518_s11 }
 0x123   : > { %720 = vrot.lane.b32.xlu0 %v2032_v14, %s1518_s11  ;;  %s2227_s11 = sld [smem:[#allocation2 + $0x6]] }
 0x124   : > { %v2132_v23 = vpop.permute.xlu1 %505  ;;  %v526_v50 = vpop.permute.xlu2 %525 }
 0x125   : > { %v549_v3 = vmax.f32 %v2067_v6, %v2132_v23  ;;  %v504_v44 = vpop.permute.xlu0 %503  ;;  %v559_v19 = vmax.f32 %v495_v62, %v526_v50  ;;  %v2271_v6 = vstv %s2170_s17  ;;  %v2285_v23 = vstv %s2192_s25  ;;  %s2298_s17 = sld [smem:[#allocation2 + $0x3]] }
 0x126   : > { %v548_v38 = vmax.f32 %v1970_v58, %v504_v44  ;;  %v2293_v50 = vstv %s2197_s27  ;;  %v2304_v44 = vstv %s2203_s30  ;;  %s2365_s25 = sld [smem:[#allocation2 + $0x13]] }
 0x127   : > { %v2137_v25 = vmax.f32 %v559_v19, %v595_v57  ;;  %v2307_v19 = vstv %s2208_s4  ;;  %s2467_s27 = sld [smem:[#allocation5 + $0x4]]  ;;  %s188_s4 = sand.u32 1, %s1505_s13  }
 0x128   : > { %s2495_s30 = sld [smem:[#allocation5 + $0x7]] }
 0x129   : > { %2961 = vst [vmem:[#allocation16_spill] sm:$0xff] %v2137_v25 }
 0x12c   : > { %v2142_v9 = vpop.permute.xlu1 %511  ;;  %v2144_v31 = vpop.permute.xlu2 %632 }
 0x12d   : > { %v552_v60 = vmax.f32 %v2081_v1, %v2142_v9  ;;  %v510_v4 = vpop.permute.xlu0 %509  ;;  %v2290_v1 = vstv %s2195_s26  ;;  %s2461_s26 = sld [smem:[#allocation5 + $0x3]] }
 0x12e   : > { %v551_v55 = vmax.f32 %v1998_v21, %v510_v4 }
 0x134   : > { %v518_v33 = vpop.permute.xlu1 %517  ;;  %v2151_v58 = vpop.permute.xlu2 %638 }
 0x135   : > { %v555_v36 = vmax.f32 %v491_v34, %v518_v33  ;;  %v516_v28 = vpop.permute.xlu0 %515  ;;  %v2175_v34 = vmax.f32 %v548_v38, %v1948_v27  ;;  %v2310_v38 = vstv %s2212_s5  ;;  %v2322_v33 = vstv %s2219_s7  ;;  %s1274_s5 = sshll.u32 %s188_s4, 8  ;;  %s1347_s7 = sshll.u32 %s1562_s16, 8 }
 0x136   : > { %v554_v2 = vmax.f32 %v2026_v48, %v516_v28 }
 0x137   : > { %v2159_v46 = vmax.f32 %v555_v36, %v2006_v10  ;;  %v2325_v36 = vstv %s2221_s8 }
 0x139   : > { %2963 = vst [vmem:[#allocation18_spill] sm:$0xff] %v2159_v46 }
 0x13c   : > { %v524_v57 = vpop.permute.xlu1 %523  ;;  %v2154_v15 = vpop.permute.xlu2 %644 }
 0x13d   : > { %2962 = vst [vmem:[#allocation17_spill] sm:$0xff] %v2154_v15  ;;  %v558_v40 = vmax.f32 %v494_v53, %v524_v57  ;;  %v2156_v42 = vpop.permute.xlu0 %521  ;;  %v2334_v57 = vstv %s2223_s9  ;;  %v2436_v15 = vstv %s2365_s25  ;;  %s1178_s9 = scalar_lea.hbm %s2910_s3, %s1347_s7 }
 0x13e   : > { %v557_v39 = vmax.f32 %v2046_v30, %v2156_v42  ;;  %v2301_v30 = vstv %s2201_s29  ;;  %v2340_v42 = vstv %s2225_s10  ;;  %s2487_s29 = sld [smem:[#allocation5 + $0x6]] }
 0x13f   : > { %v2178_v10 = vmax.f32 %v558_v40, %v2032_v14  ;;  %v2206_v14 = vmax.f32 %v551_v55, %v1975_v45  ;;  %v2230_v45 = vmax.f32 %v554_v2, %v2003_v32  ;;  %v2250_v32 = vmax.f32 %v549_v3, %v1951_v18 }
 0x140   : > { %v2268_v18 = vmax.f32 %v552_v60, %v1978_v8  ;;  %v2296_v3 = vstv %s2199_s28  ;;  %v2319_v55 = vstv %s2216_s6  ;;  %v2337_v40 = vmax.f32 %v557_v39, %v2029_v41  ;;  %s2477_s28 = sld [smem:[#allocation5 + $0x5]]  ;;  %s2697_s6 = scalar_lea.vmem [#allocation7], %s1274_s5 }
 0x141   : > { %2966 = vst [vmem:[#allocation21_spill] sm:$0xff] %v2178_v10  ;;  %s1179_s10 = sshll.u32 %s2697_s6, 4  ;;  %s1180_s10 = int_to_ptr.vmem [resolvable:$true] %s1179_s10 }
 0x142   : > { %2968 = vst [vmem:[#allocation23_spill] sm:$0xff] %v2206_v14 }
 0x143   : > { %2971 = vst [vmem:[#allocation26_spill] sm:$0xff] %v2268_v18 }
 0x144   : > { %v2161_v26 = vpop.permute.xlu1 %630  ;;  %v2163_v37 = vpop.permute.xlu2 %650 }
 0x145   : > { %2964 = vst [vmem:[#allocation19_spill] sm:$0xff] %v2163_v37  ;;  %v528_v21 = vpop.permute.xlu0 %527  ;;  %v678_v2 = vmax.f32 %v2258_v63, %v2161_v26  ;;  %v2360_v26 = vstv %s2252_s14  ;;  %v2363_v63 = vstv %s2260_s18  ;;  %s2433_s14 = sld [smem:[#allocation5]] }
 0x146   : > { %v560_v0 = vmax.f32 %v2062_v22, %v528_v21  ;;  %s2447_s18 = sld [smem:[#allocation5 + $0x1]] }
 0x148   : > { %v2168_v48 = vmax.f32 %v560_v0, %v597_v43  ;;  %v2345_v0 = vstv %s2227_s11  ;;  %s1181_s11 = sshll.u32 %s1178_s9, 4  ;;  %s1182_s11 = int_to_ptr.hbm [resolvable:$true] %s1181_s11 }
 0x14a   : > { %2965 = vst [vmem:[#allocation20_spill] sm:$0xff] %v2168_v48 }
 0x14c   : > { %v2182_v49 = vpop.permute.xlu1 %636  ;;  %v2184_v52 = vpop.permute.xlu2 %656 }
 0x14d   : > { %2967 = vst [vmem:[#allocation22_spill] sm:$0xff] %v2184_v52  ;;  %v635_v43 = vpop.permute.xlu0 %634 }
 0x14e   : > { %v680_v27 = vmax.f32 %v2085_v29, %v635_v43  ;;  %v2348_v43 = vstv %s2232_s0  ;;  %s2379_s0 = sld [smem:[#allocation2 + $0x17]] }
 0x154   : > { %v2210_v62 = vpop.permute.xlu1 %642  ;;  %v699_v51 = vpop.permute.xlu2 %698  ;;  %v2439_v18 = vstv %s2379_s0  ;;  %s1463_s0 = scalar_lea.hbm %s2910_s3, 512 }
 0x155   : > { %2969 = vst [vmem:[#allocation24_spill] sm:$0xff] %v2210_v62  ;;  %v641_v20 = vpop.permute.xlu0 %640  ;;  %v744_v4 = vmax.f32 %v680_v27, %v699_v51  ;;  %v2351_v27 = vstv %s2236_s1  ;;  %v2354_v51 = vstv %s2242_s2  ;;  %s2393_s1 = sld [smem:[#allocation2 + $0x1b]] }
 0x156   : > { %v683_v7 = vmax.f32 %v2099_v12, %v641_v20  ;;  %v2357_v20 = vstv %s2244_s21  ;;  %s2400_s2 = sld [smem:[#allocation2 + $0x1f]]  ;;  %2987 = vst [vmem:[#allocation40_spill] sm:$0xff] %v2439_v18 }
 0x157   : > { %v2368_v41 = vmul.f32 %v2271_v6, %v744_v4  ;;  %v2377_v39 = vmul.f32 %v2282_v17, %v744_v4  ;;  %v2382_v54 = vmul.f32 %v2285_v23, %v744_v4  ;;  %v2385_v24 = vmul.f32 %v2290_v1, %v744_v4  ;;  %s2455_s21 = sld [smem:[#allocation5 + $0x2]] }
 0x158   : > { %v2388_v29 = vmul.f32 %v2293_v50, %v744_v4  ;;  %v2391_v8 = vmul.f32 %v2296_v3, %v744_v4 }
 0x159   : > { %2973 = vst [vmem:[#allocation28_spill] sm:$0xff] %v2368_v41  ;;  %v2423_v41 = vstv %s2342_s24 }
 0x15a   : > { %2976 = vst [vmem:[#allocation31_spill] sm:$0xff] %v2377_v39 }
 0x15b   : > { %2977 = vst [vmem:[#allocation32_spill] sm:$0xff] %v2382_v54 }
 0x15c   : > { %v2234_v53 = vpop.permute.xlu1 %648  ;;  %v705_v12 = vpop.permute.xlu2 %704  ;;  %2978 = vst [vmem:[#allocation33_spill] sm:$0xff] %v2385_v24  ;;  %v2414_v24 = vstv %s2316_s19  ;;  %v2445_v11 = vstv %s2400_s2  ;;  %s1457_s19 = sshra.s32 %s1182_s11, 4  ;;  %s1458_s19 = int_to_ptr.hbm [resolvable:$true] %s1457_s19 }
 0x15d   : > { %v2240_v35 = vpop.permute.xlu0 %646  ;;  %v747_v21 = vmax.f32 %v683_v7, %v705_v12  ;;  %v2371_v7 = vmul.f32 %v2274_v5, %v744_v4  ;;  %v2374_v12 = vmul.f32 %v2279_v16, %v744_v4  ;;  %2979 = vst [vmem:[#allocation34_spill] sm:$0xff] %v2388_v29  ;;  %v2411_v29 = vstv %s2298_s17  ;;  %s1167_s17 = scalar_lea.sflag [#allocation3], %s188_s4  ;;  %p1464_p3 = scmp.lt.s32.totalorder %s1458_s19, %s2910_s3 }
 0x15e   : > { %2970 = vst [vmem:[#allocation25_spill] sm:$0xff] %v2240_v35  ;;  %v2981_v35 = vmax.f32 %v2140_v13, %v2144_v31  ;;  %v2984_v39 = vmax.f32 %v2230_v45, %v2234_v53 }
 0x15f   : > { %2974 = vst [vmem:[#allocation29_spill] sm:$0xff] %v2371_v7  ;;  %v767_v61 = vmul.f32 %v2301_v30, %v747_v21  ;;  %v818_v59 = vmul.f32 %v2304_v44, %v747_v21  ;;  %v869_v56 = vmul.f32 %v2307_v19, %v747_v21  ;;  %v920_v4 = vmul.f32 %v2310_v38, %v747_v21 }
 0x160   : > { %2975 = vst [vmem:[#allocation30_spill] sm:$0xff] %v2374_v12  ;;  %v971_v52 = vmul.f32 %v2319_v55, %v747_v21  ;;  %v1022_v10 = vmul.f32 %v2322_v33, %v747_v21  ;;  %v1073_v37 = vmul.f32 %v2325_v36, %v747_v21  ;;  %v1124_v48 = vmul.f32 %v2334_v57, %v747_v21 }
 0x161   : > { %2980 = vst [vmem:[#allocation35_spill] sm:$0xff] %v2391_v8  ;;  %v2420_v7 = vstv %s2329_s20  ;;  %s1459_s20 = scalar_lea.hbm %s1458_s19, 256 }
 0x162   : > { %2982 = vst [vmem:[#allocation36_spill] sm:$0xff] %v2411_v29  ;;  %v2442_v29 = vstv %s2393_s1  ;;  %p1460_p0 = scmp.ne.s32.totalorder %s1458_s19, %s1459_s20  ;;  %p1465_p4 = scmp.lt.s32.totalorder %s1463_s0, %s1459_s20 }
 0x163   : > { %2983 = vst [vmem:[#allocation37_spill] sm:$0xff] %v2414_v24 }
 0x164   : > { %v2312_v9 = vpop.permute.xlu1 %654  ;;  %v2314_v60 = vpop.permute.xlu2 %658  ;;  %2985 = vst [vmem:[#allocation38_spill] sm:$0xff] %v2420_v7  ;;  %p1461_p1 = pnand %p1460_p0, %p1579_p5  ;;  %p1466_p7 = por %p1465_p4, %p1464_p3 }
 0x165   : > { %2972 = vst [vmem:[#allocation27_spill] sm:$0xff] %v2314_v60  ;;  %v2327_v28 = vpop.permute.xlu0 %652 }
 0x166   : > { %2986 = vst [vmem:[#allocation39_spill] sm:$0xff] %v2423_v41  ;;  %p1462_p2 = pneg %p1461_p1 }
 0x167   : > { %2988 = vst [vmem:[#allocation41_spill] sm:$0xff] %v2442_v29 }
 0x168   : > { %p1467_p8 = pnand %p1466_p7, %p1462_p2 }
 0x16c   : > { %v697_v46 = vpop.permute.xlu1 %696  ;;  %v713_v22 = vpop.permute.xlu2 %712 }
 0x16d   : > { %v743_v47 = vmax.f32 %v2981_v35, %v697_v46  ;;  %v695_v8 = vpop.permute.xlu0 %694  ;;  %v751_v12 = vmax.f32 %v2984_v39, %v713_v22 }
 0x16e   : > { %v742_v54 = vmax.f32 %v678_v2, %v695_v8 }
 0x16f   : > { %v761_v21 = vmul.f32 %v2271_v6, %v743_v47  ;;  %v812_v62 = vmul.f32 %v2274_v5, %v743_v47  ;;  %v863_v13 = vmul.f32 %v2279_v16, %v743_v47  ;;  %v914_v31 = vmul.f32 %v2282_v17, %v743_v47 }
 0x170   : > { %v965_v46 = vmul.f32 %v2285_v23, %v743_v47  ;;  %v1016_v22 = vmul.f32 %v2290_v1, %v743_v47  ;;  %v1067_v45 = vmul.f32 %v2293_v50, %v743_v47  ;;  %v1118_v53 = vmul.f32 %v2296_v3, %v743_v47 }
 0x171   : > { %v771_v35 = vadd.f32 %v767_v61, %v761_v21  ;;  %v822_v8 = vadd.f32 %v818_v59, %v812_v62  ;;  %v873_v2 = vadd.f32 %v869_v56, %v863_v13  ;;  %v924_v39 = vadd.f32 %v920_v4, %v914_v31 }
 0x172   : > { %v975_v14 = vadd.f32 %v971_v52, %v965_v46  ;;  %v1026_v41 = vadd.f32 %v1022_v10, %v1016_v22  ;;  %v1077_v7 = vadd.f32 %v1073_v37, %v1067_v45  ;;  %v1128_v24 = vadd.f32 %v1124_v48, %v1118_v53 }
 0x173   : > { %v690_v47 = vmax.f32 %v2337_v40, %v2312_v9  ;;  %v760_v37 = vmul.f32 %v2271_v6, %v742_v54  ;;  %v811_v48 = vmul.f32 %v2274_v5, %v742_v54  ;;  %v777_v52 = vmul.f32 %v2340_v42, %v751_v12 }
 0x174   : > { %v703_v10 = vpop.permute.xlu1 %702  ;;  %v828_v62 = vmul.f32 %v2345_v0, %v751_v12  ;;  %v879_v59 = vmul.f32 %v2348_v43, %v751_v12  ;;  %v930_v61 = vmul.f32 %v2351_v27, %v751_v12  ;;  %v981_v9 = vmul.f32 %v2354_v51, %v751_v12 }
 0x175   : > { %v701_v4 = vpop.permute.xlu0 %700  ;;  %v1032_v40 = vmul.f32 %v2357_v20, %v751_v12  ;;  %v1083_v21 = vmul.f32 %v2360_v26, %v751_v12  ;;  %v1134_v13 = vmul.f32 %v2363_v63, %v751_v12  ;;  %v2469_v31 = vadd.f32 %v777_v52, %v771_v35 }
 0x176   : > { %v2471_v46 = vadd.f32 %v828_v62, %v822_v8  ;;  %v2473_v22 = vadd.f32 %v879_v59, %v873_v2  ;;  %v2475_v45 = vadd.f32 %v930_v61, %v924_v39  ;;  %v2479_v53 = vadd.f32 %v981_v9, %v975_v14 }
 0x177   : > { %2989 = vst [vmem:[#allocation42_spill] sm:$0xff] %v2469_v31  ;;  %v2481_v56 = vadd.f32 %v1032_v40, %v1026_v41  ;;  %v2483_v60 = vadd.f32 %v1083_v21, %v1077_v7  ;;  %v2485_v25 = vadd.f32 %v1134_v13, %v1128_v24  ;;  %v862_v12 = vmul.f32 %v2279_v16, %v742_v54 }
 0x178   : > { %2990 = vst [vmem:[#allocation43_spill] sm:$0xff] %v2471_v46  ;;  %v913_v35 = vmul.f32 %v2282_v17, %v742_v54  ;;  %v964_v8 = vmul.f32 %v2285_v23, %v742_v54  ;;  %v2997_v2 = vmax.f32 %v2250_v32, %v2151_v58  ;;  %v1015_v14 = vmul.f32 %v2290_v1, %v742_v54 }
 0x179   : > { %2991 = vst [vmem:[#allocation44_spill] sm:$0xff] %v2473_v22  ;;  %v1066_v41 = vmul.f32 %v2293_v50, %v742_v54  ;;  %v1117_v24 = vmul.f32 %v2296_v3, %v742_v54  ;;  %v2998_v7 = vmax.f32 %v2175_v34, %v2182_v49  ;;  %v719_v34 = vpop.permute.xlu2 %718 }
 0x17a   : > { %2992 = vst [vmem:[#allocation45_spill] sm:$0xff] %v2475_v45  ;;  %v746_v39 = vmax.f32 %v2997_v2, %v703_v10 }
 0x17b   : > { %2993 = vst [vmem:[#allocation46_spill] sm:$0xff] %v2479_v53  ;;  %v745_v52 = vmax.f32 %v2998_v7, %v701_v4  ;;  %v3010_v53 = vld [vmem:[#allocation17_spill] sm:$0xff] }
 0x17c   : > { %2994 = vst [vmem:[#allocation47_spill] sm:$0xff] %v2481_v56  ;;  %v766_v62 = vmul.f32 %v2301_v30, %v746_v39  ;;  %v817_v59 = vmul.f32 %v2304_v44, %v746_v39  ;;  %v868_v61 = vmul.f32 %v2307_v19, %v746_v39  ;;  %v919_v58 = vmul.f32 %v2310_v38, %v746_v39  ;;  %v709_v49 = vpop.permute.xlu1 %708 }
 0x17d   : > { %2995 = vst [vmem:[#allocation48_spill] sm:$0xff] %v2483_v60  ;;  %v970_v32 = vmul.f32 %v2319_v55, %v746_v39  ;;  %v1021_v10 = vmul.f32 %v2322_v33, %v746_v39  ;;  %v1072_v9 = vmul.f32 %v2325_v36, %v746_v39  ;;  %v1123_v54 = vmul.f32 %v2334_v57, %v746_v39  ;;  %v707_v2 = vpop.permute.xlu0 %706 }
 0x17e   : > { %2996 = vst [vmem:[#allocation49_spill] sm:$0xff] %v2485_v25  ;;  %v2511_v4 = vadd.f32 %v766_v62, %v760_v37  ;;  %v2513_v40 = vadd.f32 %v817_v59, %v811_v48  ;;  %v2515_v21 = vadd.f32 %v868_v61, %v862_v12  ;;  %v2517_v13 = vadd.f32 %v919_v58, %v913_v35  ;;  %v2999_v37 = vld [vmem:[#allocation15_spill] sm:$0xff] }
 0x17f   : > { %v2519_v7 = vadd.f32 %v970_v32, %v964_v8  ;;  %v2521_v39 = vadd.f32 %v1021_v10, %v1015_v14  ;;  %v2523_v25 = vadd.f32 %v1072_v9, %v1066_v41  ;;  %v2525_v60 = vadd.f32 %v1123_v54, %v1117_v24 }
 0x180   : > { %v2529_v48 = vmax.f32 %v690_v47, %v719_v34  ;;  %v2532_v12 = vstv %s2433_s14  ;;  %v2535_v35 = vstv %s2447_s18  ;;  %v2538_v59 = vstv %s2455_s21 }
 0x181   : > { %3000 = vst [vmem:[#allocation15_spill] sm:$0xff] %v2532_v12  ;;  %v2541_v61 = vstv %s2461_s26  ;;  %v2544_v8 = vstv %s2467_s27  ;;  %v2547_v14 = vstv %s2477_s28  ;;  %v763_v41 = vmul.f32 %v2271_v6, %v745_v52  ;;  %v3008_v6 = vld [vmem:[#allocation36_spill] sm:$0xff] }
 0x182   : > { %3001 = vst [vmem:[#allocation50_spill] sm:$0xff] %v2535_v35  ;;  %v814_v24 = vmul.f32 %v2274_v5, %v745_v52  ;;  %v2552_v58 = vstv %s2487_s29  ;;  %v2555_v47 = vstv %s2495_s30  ;;  %v865_v32 = vmul.f32 %v2279_v16, %v745_v52  ;;  %v3009_v5 = vld [vmem:[#allocation26_spill] sm:$0xff]  ;;  %v3012_v16 = vld [vmem:[#allocation37_spill] sm:$0xff] }
 0x183   : > { %3002 = vst [vmem:[#allocation51_spill] sm:$0xff] %v2538_v59  ;;  %v916_v10 = vmul.f32 %v2282_v17, %v745_v52  ;;  %v967_v9 = vmul.f32 %v2285_v23, %v745_v52  ;;  %v1018_v54 = vmul.f32 %v2290_v1, %v745_v52  ;;  %v1069_v34 = vmul.f32 %v2293_v50, %v745_v52  ;;  %v3013_v17 = vld [vmem:[#allocation38_spill] sm:$0xff]  ;;  %v3014_v1 = vld [vmem:[#allocation39_spill] sm:$0xff] }
 0x184   : > { %3003 = vst [vmem:[#allocation52_spill] sm:$0xff] %v2541_v61  ;;  %v1120_v62 = vmul.f32 %v2296_v3, %v745_v52  ;;  %v2565_v56 = vmul.f32 %v3008_v6, %v2529_v48  ;;  %v3011_v45 = vmax.f32 %v3009_v5, %v3010_v53  ;;  %v2572_v46 = vmul.f32 %v3012_v16, %v2529_v48  ;;  %v3015_v3 = vld [vmem:[#allocation23_spill] sm:$0xff]  ;;  %v3016_v52 = vld [vmem:[#allocation24_spill] sm:$0xff] }
 0x185   : > { %3004 = vst [vmem:[#allocation53_spill] sm:$0xff] %v2544_v8  ;;  %v2576_v23 = vmul.f32 %v3013_v17, %v2529_v48  ;;  %v2580_v50 = vmul.f32 %v3014_v1, %v2529_v48  ;;  %v3017_v31 = vmax.f32 %v3015_v3, %v3016_v52  ;;  %v2589_v16 = vpop.permute.xlu0 %660 }
 0x186   : > { %3005 = vst [vmem:[#allocation54_spill] sm:$0xff] %v2547_v14  ;;  %v749_v22 = vmax.f32 %v3011_v45, %v709_v49 }
 0x187   : > { %3006 = vst [vmem:[#allocation55_spill] sm:$0xff] %v2552_v58  ;;  %v748_v6 = vmax.f32 %v3017_v31, %v707_v2 }
 0x188   : > { %3007 = vst [vmem:[#allocation56_spill] sm:$0xff] %v2555_v47  ;;  %v711_v47 = vpop.permute.xlu1 %710  ;;  %v769_v53 = vmul.f32 %v2301_v30, %v749_v22  ;;  %v820_v45 = vmul.f32 %v2304_v44, %v749_v22  ;;  %v871_v49 = vmul.f32 %v2307_v19, %v749_v22  ;;  %v922_v5 = vmul.f32 %v2310_v38, %v749_v22 }
 0x189   : > { %v973_v17 = vmul.f32 %v2319_v55, %v749_v22  ;;  %v1024_v1 = vmul.f32 %v2322_v33, %v749_v22  ;;  %v1075_v58 = vmul.f32 %v2325_v36, %v749_v22  ;;  %v1126_v3 = vmul.f32 %v2334_v57, %v749_v22 }
 0x18a   : > { %v2595_v31 = vadd.f32 %v769_v53, %v763_v41  ;;  %v2597_v2 = vadd.f32 %v820_v45, %v814_v24  ;;  %v2599_v52 = vadd.f32 %v871_v49, %v865_v32  ;;  %v2601_v14 = vadd.f32 %v922_v5, %v916_v10 }
 0x18b   : > { %v2603_v8 = vadd.f32 %v973_v17, %v967_v9  ;;  %v2605_v61 = vadd.f32 %v1024_v1, %v1018_v54  ;;  %v2607_v59 = vadd.f32 %v1075_v58, %v1069_v34  ;;  %v2609_v35 = vadd.f32 %v1126_v3, %v1120_v62  ;;  %v3018_v58 = vld [vmem:[#allocation28_spill] sm:$0xff]  ;;  %v3019_v62 = vld [vmem:[#allocation29_spill] sm:$0xff] }
 0x18c   : > { %v768_v12 = vmul.f32 %v2301_v30, %v748_v6  ;;  %v819_v22 = vmul.f32 %v2304_v44, %v748_v6  ;;  %v870_v41 = vmul.f32 %v2307_v19, %v748_v6  ;;  %v921_v24 = vmul.f32 %v2310_v38, %v748_v6  ;;  %v3020_v30 = vld [vmem:[#allocation30_spill] sm:$0xff]  ;;  %v3021_v19 = vld [vmem:[#allocation31_spill] sm:$0xff]  ;;  %v3022_v38 = vld [vmem:[#allocation32_spill] sm:$0xff] }
 0x18d   : > { %v972_v32 = vmul.f32 %v2319_v55, %v748_v6  ;;  %v1023_v10 = vmul.f32 %v2322_v33, %v748_v6  ;;  %v1074_v9 = vmul.f32 %v2325_v36, %v748_v6  ;;  %v1125_v54 = vmul.f32 %v2334_v57, %v748_v6  ;;  %v3023_v33 = vld [vmem:[#allocation33_spill] sm:$0xff]  ;;  %v3024_v36 = vld [vmem:[#allocation34_spill] sm:$0xff] }
 0x18e   : > { %v2620_v34 = vadd.f32 %v768_v12, %v3018_v58  ;;  %v2623_v17 = vadd.f32 %v819_v22, %v3019_v62  ;;  %v2626_v44 = vadd.f32 %v870_v41, %v3020_v30  ;;  %v2629_v1 = vadd.f32 %v921_v24, %v3021_v19  ;;  %v3025_v12 = vld [vmem:[#allocation35_spill] sm:$0xff]  ;;  %v3026_v22 = vld [vmem:[#allocation14_spill] sm:$0xff]  ;;  %v3027_v41 = vld [vmem:[#allocation25_spill] sm:$0xff] }
 0x18f   : > { %v2632_v55 = vadd.f32 %v972_v32, %v3022_v38  ;;  %v2635_v53 = vadd.f32 %v1023_v10, %v3023_v33  ;;  %v2638_v57 = vadd.f32 %v1074_v9, %v3024_v36  ;;  %v2641_v6 = vadd.f32 %v1125_v54, %v3025_v12  ;;  %v715_v10 = vpop.permute.xlu0 %714  ;;  %v3029_v54 = vld [vmem:[#allocation20_spill] sm:$0xff]  ;;  %v3031_v19 = vld [vmem:[#allocation18_spill] sm:$0xff]  ;;  %v3032_v38 = vld [vmem:[#allocation19_spill] sm:$0xff] }
 0x190   : > { %v717_v45 = vpop.permute.xlu1 %716  ;;  %v990_v49 = vmul.f32 %v2436_v15, %v2529_v48  ;;  %v1041_v5 = vmul.f32 %v2439_v18, %v2529_v48  ;;  %v1092_v3 = vmul.f32 %v2442_v29, %v2529_v48  ;;  %v3028_v24 = vmax.f32 %v3026_v22, %v3027_v41 }
 0x191   : > { %v1143_v9 = vmul.f32 %v2445_v11, %v2529_v48  ;;  %v693_v58 = vmax.f32 %v3029_v54, %v2589_v16  ;;  %v3030_v62 = vmax.f32 %v2999_v37, %v2327_v28  ;;  %v3033_v33 = vmax.f32 %v3031_v19, %v3032_v38 }
 0x192   : > { %v750_v32 = vmax.f32 %v3028_v24, %v711_v47 }
 0x193   : > { %v2659_v30 = vmax.f32 %v3030_v62, %v717_v45  ;;  %v2664_v36 = vmax.f32 %v3033_v33, %v715_v10 }
 0x194   : > { %v776_v47 = vmul.f32 %v2340_v42, %v750_v32  ;;  %v827_v12 = vmul.f32 %v2345_v0, %v750_v32  ;;  %v878_v48 = vmul.f32 %v2348_v43, %v750_v32  ;;  %v929_v22 = vmul.f32 %v2351_v27, %v750_v32 }
 0x195   : > { %v980_v16 = vmul.f32 %v2354_v51, %v750_v32  ;;  %v1031_v28 = vmul.f32 %v2357_v20, %v750_v32  ;;  %v1082_v37 = vmul.f32 %v2360_v26, %v750_v32  ;;  %v1133_v45 = vmul.f32 %v2363_v63, %v750_v32 }
 0x196   : > { %v780_v41 = vadd.f32 %v776_v47, %v2511_v4  ;;  %v831_v24 = vadd.f32 %v827_v12, %v2513_v40  ;;  %v882_v10 = vadd.f32 %v878_v48, %v2515_v21  ;;  %v933_v54 = vadd.f32 %v929_v22, %v2517_v13  ;;  %v3034_v48 = vld [vmem:[#allocation15_spill] sm:$0xff]  ;;  %v3035_v22 = vld [vmem:[#allocation50_spill] sm:$0xff] }
 0x197   : > { %v984_v62 = vadd.f32 %v980_v16, %v2519_v7  ;;  %v1035_v19 = vadd.f32 %v1031_v28, %v2521_v39  ;;  %v1086_v38 = vadd.f32 %v1082_v37, %v2523_v25  ;;  %v1137_v33 = vadd.f32 %v1133_v45, %v2525_v60  ;;  %v3036_v16 = vld [vmem:[#allocation51_spill] sm:$0xff]  ;;  %v3037_v28 = vld [vmem:[#allocation52_spill] sm:$0xff]  ;;  %v3038_v45 = vld [vmem:[#allocation53_spill] sm:$0xff] }
 0x198   : > { %v790_v32 = vadd.f32 %v2565_v56, %v780_v41  ;;  %v841_v4 = vadd.f32 %v2572_v46, %v831_v24  ;;  %v892_v40 = vadd.f32 %v2576_v23, %v882_v10  ;;  %v943_v21 = vadd.f32 %v2580_v50, %v933_v54  ;;  %v3039_v41 = vld [vmem:[#allocation54_spill] sm:$0xff]  ;;  %v3040_v24 = vld [vmem:[#allocation55_spill] sm:$0xff]  ;;  %v3041_v10 = vld [vmem:[#allocation56_spill] sm:$0xff] }
 0x199   : > { %v994_v47 = vadd.f32 %v990_v49, %v984_v62  ;;  %v1045_v13 = vadd.f32 %v1041_v5, %v1035_v19  ;;  %v1096_v12 = vadd.f32 %v1092_v3, %v1086_v38  ;;  %v1147_v7 = vadd.f32 %v1143_v9, %v1137_v33  ;;  %v725_v49 = vpop.permute.xlu2 %724 }
 0x19a   : > { %v796_v39 = vadd.f32 %v3034_v48, %v790_v32  ;;  %v847_v25 = vadd.f32 %v3035_v22, %v841_v4  ;;  %v898_v60 = vadd.f32 %v3036_v16, %v892_v40  ;;  %v949_v37 = vadd.f32 %v3037_v28, %v943_v21 }
 0x19b   : > { %v1000_v56 = vadd.f32 %v3038_v45, %v994_v47  ;;  %v1051_v46 = vadd.f32 %v3039_v41, %v1045_v13  ;;  %v1102_v23 = vadd.f32 %v3040_v24, %v1096_v12  ;;  %v1153_v50 = vadd.f32 %v3041_v10, %v1147_v7  ;;  %v3042_v7 = vld [vmem:[#allocation36_spill] sm:$0xff] }
 0x19c   : > { %v800_v5 = vmax.f32 %v796_v39, 0.0  ;;  %v851_v3 = vmax.f32 %v847_v25, 0.0  ;;  %v902_v9 = vmax.f32 %v898_v60, 0.0  ;;  %v953_v54 = vmax.f32 %v949_v37, 0.0  ;;  %v3043_v25 = vld [vmem:[#allocation37_spill] sm:$0xff]  ;;  %v3044_v37 = vld [vmem:[#allocation38_spill] sm:$0xff] }
 0x19d   : > { %v1004_v62 = vmax.f32 %v1000_v56, 0.0  ;;  %v1055_v19 = vmax.f32 %v1051_v46, 0.0  ;;  %v1106_v38 = vmax.f32 %v1102_v23, 0.0  ;;  %v1157_v33 = vmax.f32 %v1153_v50, 0.0  ;;  %v3045_v46 = vld [vmem:[#allocation39_spill] sm:$0xff] }
 0x19e   : > { %805 = vst.msk [vmem:[%s2697_s6] sm:$0xff] %vm804_vm2, %v800_v5  ;;  %v757_v32 = vmax.f32 %v693_v58, %v725_v49  ;;  %v779_v4 = vmul.f32 %v2340_v42, %v2659_v30  ;;  %v830_v40 = vmul.f32 %v2345_v0, %v2659_v30  ;;  %v881_v21 = vmul.f32 %v2348_v43, %v2659_v30 }
 0x19f   : > { %1284 = vst.msk [vmem:[%s2697_s6 + $0x20] sm:$0xff] %vm804_vm2, %v851_v3  ;;  %v932_v47 = vmul.f32 %v2351_v27, %v2659_v30  ;;  %v983_v13 = vmul.f32 %v2354_v51, %v2659_v30  ;;  %v1034_v58 = vmul.f32 %v2357_v20, %v2659_v30  ;;  %v1085_v12 = vmul.f32 %v2360_v26, %v2659_v30 }
 0x1a0   : > { %1293 = vst.msk [vmem:[%s2697_s6 + $0x40] sm:$0xff] %vm804_vm2, %v902_v9  ;;  %v789_v39 = vmul.f32 %v3042_v7, %v757_v32  ;;  %v840_v60 = vmul.f32 %v3043_v25, %v757_v32  ;;  %v891_v56 = vmul.f32 %v3044_v37, %v757_v32  ;;  %v942_v23 = vmul.f32 %v3045_v46, %v757_v32 }
 0x1a1   : > { %1302 = vst.msk [vmem:[%s2697_s6 + $0x60] sm:$0xff] %vm804_vm2, %v953_v54  ;;  %v993_v50 = vmul.f32 %v2436_v15, %v757_v32  ;;  %v1044_v49 = vmul.f32 %v2439_v18, %v757_v32  ;;  %v1095_v5 = vmul.f32 %v2442_v29, %v757_v32  ;;  %v1146_v3 = vmul.f32 %v2445_v11, %v757_v32 }
 0x1a2   : > { %1311 = vst.msk [vmem:[%s2697_s6 + $0x80] sm:$0xff] %vm804_vm2, %v1004_v62  ;;  %v783_v9 = vadd.f32 %v779_v4, %v2595_v31  ;;  %v834_v37 = vadd.f32 %v830_v40, %v2597_v2  ;;  %v885_v46 = vadd.f32 %v881_v21, %v2599_v52  ;;  %v936_v25 = vadd.f32 %v932_v47, %v2601_v14 }
 0x1a3   : > { %1320 = vst.msk [vmem:[%s2697_s6 + $0xa0] sm:$0xff] %vm804_vm2, %v1055_v19  ;;  %v987_v54 = vadd.f32 %v983_v13, %v2603_v8  ;;  %v1038_v18 = vadd.f32 %v1034_v58, %v2605_v61  ;;  %v1089_v29 = vadd.f32 %v1085_v12, %v2607_v59  ;;  %v1136_v32 = vmul.f32 %v2363_v63, %v2659_v30 }
 0x1a4   : > { %1329 = vst.msk [vmem:[%s2697_s6 + $0xc0] sm:$0xff] %vm804_vm2, %v1106_v38  ;;  %v793_v31 = vadd.f32 %v789_v39, %v783_v9  ;;  %v844_v62 = vadd.f32 %v840_v60, %v834_v37  ;;  %v895_v2 = vadd.f32 %v891_v56, %v885_v46  ;;  %v946_v4 = vadd.f32 %v942_v23, %v936_v25 }
 0x1a5   : > { %1338 = vst.msk [vmem:[%s2697_s6 + $0xe0] sm:$0xff] %vm804_vm2, %v1157_v33  ;;  %v997_v14 = vadd.f32 %v993_v50, %v987_v54  ;;  %v1048_v52 = vadd.f32 %v1044_v49, %v1038_v18  ;;  %v1099_v19 = vadd.f32 %v1095_v5, %v1089_v29  ;;  %v1140_v8 = vadd.f32 %v1136_v32, %v2609_v35  ;;  %v723_v49 = vpop.permute.xlu1 %722 }
 0x1a6   : > { %v799_v61 = vadd.f32 %v3034_v48, %v793_v31  ;;  %v850_v59 = vadd.f32 %v3035_v22, %v844_v62  ;;  %v901_v30 = vadd.f32 %v3036_v16, %v895_v2  ;;  %v952_v38 = vadd.f32 %v3037_v28, %v946_v4  ;;  %v3049_v31 = vld [vmem:[#allocation21_spill] sm:$0xff]  ;;  %v3050_v62 = vld [vmem:[#allocation22_spill] sm:$0xff] }
 0x1a7   : > { %v1003_v40 = vadd.f32 %v3038_v45, %v997_v14  ;;  %v1054_v21 = vadd.f32 %v3039_v41, %v1048_v52  ;;  %v1105_v33 = vadd.f32 %v3040_v24, %v1099_v19  ;;  %v1150_v18 = vadd.f32 %v1146_v3, %v1140_v8  ;;  %v3054_v14 = vld [vmem:[#allocation39_spill] sm:$0xff]  ;;  %v3055_v8 = vld [vmem:[#allocation40_spill] sm:$0xff] }
 0x1a8   : > { %v803_v29 = vmax.f32 %v799_v61, 0.0  ;;  %v854_v47 = vmax.f32 %v850_v59, 0.0  ;;  %v905_v35 = vmax.f32 %v901_v30, 0.0  ;;  %v956_v13 = vmax.f32 %v952_v38, 0.0  ;;  %v3056_v61 = vld [vmem:[#allocation41_spill] sm:$0xff] }
 0x1a9   : > { %v1007_v58 = vmax.f32 %v1003_v40, 0.0  ;;  %v1058_v12 = vmax.f32 %v1054_v21, 0.0  ;;  %v1109_v39 = vmax.f32 %v1105_v33, 0.0  ;;  %v1156_v25 = vadd.f32 %v3041_v10, %v1150_v18 }
 0x1aa   : > { %808 = vst.msk [vmem:[%s2697_s6 + $0x18] sm:$0xff] %vm804_vm2, %v803_v29  ;;  %v778_v60 = vmul.f32 %v2340_v42, %v2664_v36  ;;  %v829_v37 = vmul.f32 %v2345_v0, %v2664_v36  ;;  %v880_v56 = vmul.f32 %v2348_v43, %v2664_v36  ;;  %v931_v46 = vmul.f32 %v2351_v27, %v2664_v36 }
 0x1ab   : > { %1287 = vst.msk [vmem:[%s2697_s6 + $0x38] sm:$0xff] %vm804_vm2, %v854_v47  ;;  %v1160_v23 = vmax.f32 %v1156_v25, 0.0  ;;  %v982_v50 = vmul.f32 %v2354_v51, %v2664_v36  ;;  %v1033_v42 = vmul.f32 %v2357_v20, %v2664_v36  ;;  %v1084_v0 = vmul.f32 %v2360_v26, %v2664_v36  ;;  %v721_v51 = vpop.permute.xlu0 %720 }
 0x1ac   : > { %1296 = vst.msk [vmem:[%s2697_s6 + $0x58] sm:$0xff] %vm804_vm2, %v905_v35  ;;  %v782_v43 = vadd.f32 %v778_v60, %v2620_v34  ;;  %v833_v27 = vadd.f32 %v829_v37, %v2623_v17  ;;  %v884_v5 = vadd.f32 %v880_v56, %v2626_v44  ;;  %v935_v3 = vadd.f32 %v931_v46, %v2629_v1  ;;  %v3046_v34 = vld [vmem:[#allocation16_spill] sm:$0xff]  ;;  %v3047_v17 = vld [vmem:[#allocation27_spill] sm:$0xff] }
 0x1ad   : > { %1305 = vst.msk [vmem:[%s2697_s6 + $0x78] sm:$0xff] %vm804_vm2, %v956_v13  ;;  %v986_v20 = vadd.f32 %v982_v50, %v2632_v55  ;;  %v1037_v26 = vadd.f32 %v1033_v42, %v2635_v53  ;;  %v1088_v9 = vadd.f32 %v1084_v0, %v2638_v57  ;;  %v1135_v54 = vmul.f32 %v2363_v63, %v2664_v36  ;;  %v3052_v57 = vld [vmem:[#allocation37_spill] sm:$0xff]  ;;  %v3053_v36 = vld [vmem:[#allocation38_spill] sm:$0xff] }
 0x1ae   : > { %1314 = vst.msk [vmem:[%s2697_s6 + $0x98] sm:$0xff] %vm804_vm2, %v1007_v58  ;;  %v3048_v44 = vmax.f32 %v3046_v34, %v3047_v17  ;;  %v3051_v55 = vmax.f32 %v3049_v31, %v3050_v62  ;;  %v3060_v62 = vld [vmem:[#allocation45_spill] sm:$0xff] }
 0x1af   : > { %1323 = vst.msk [vmem:[%s2697_s6 + $0xb8] sm:$0xff] %vm804_vm2, %v1058_v12  ;;  %v1139_v1 = vadd.f32 %v1135_v54, %v2641_v6 }
 0x1b0   : > { %v756_v32 = vmax.f32 %v3048_v44, %v723_v49  ;;  %v755_v2 = vmax.f32 %v3051_v55, %v721_v51  ;;  %1332 = vst.msk [vmem:[%s2697_s6 + $0xd8] sm:$0xff] %vm804_vm2, %v1109_v39  ;;  %v3058_v44 = vld [vmem:[#allocation43_spill] sm:$0xff] }
 0x1b1   : > { %1341 = vst.msk [vmem:[%s2697_s6 + $0xf8] sm:$0xff] %vm804_vm2, %v1160_v23 }
 0x1b2   : > { %v788_v53 = vmul.f32 %v3042_v7, %v756_v32  ;;  %v839_v63 = vmul.f32 %v3052_v57, %v756_v32  ;;  %v890_v4 = vmul.f32 %v3053_v36, %v756_v32  ;;  %v941_v52 = vmul.f32 %v3054_v14, %v756_v32 }
 0x1b3   : > { %v992_v19 = vmul.f32 %v2436_v15, %v756_v32  ;;  %v1043_v6 = vmul.f32 %v3055_v8, %v756_v32  ;;  %v1094_v59 = vmul.f32 %v3056_v61, %v756_v32  ;;  %v1145_v30 = vmul.f32 %v2445_v11, %v756_v32 }
 0x1b4   : > { %v792_v38 = vadd.f32 %v788_v53, %v782_v43  ;;  %v843_v40 = vadd.f32 %v839_v63, %v833_v27  ;;  %v894_v21 = vadd.f32 %v890_v4, %v884_v5  ;;  %v945_v33 = vadd.f32 %v941_v52, %v935_v3 }
 0x1b5   : > { %v996_v18 = vadd.f32 %v992_v19, %v986_v20  ;;  %v1047_v29 = vadd.f32 %v1043_v6, %v1037_v26  ;;  %v1098_v47 = vadd.f32 %v1094_v59, %v1088_v9  ;;  %v1149_v35 = vadd.f32 %v1145_v30, %v1139_v1  ;;  %v3059_v1 = vld [vmem:[#allocation44_spill] sm:$0xff] }
 0x1b6   : > { %v798_v13 = vadd.f32 %v3034_v48, %v792_v38  ;;  %v849_v58 = vadd.f32 %v3035_v22, %v843_v40  ;;  %v900_v12 = vadd.f32 %v3036_v16, %v894_v21  ;;  %v951_v39 = vadd.f32 %v3037_v28, %v945_v33 }
 0x1b7   : > { %v1002_v25 = vadd.f32 %v3038_v45, %v996_v18  ;;  %v1053_v60 = vadd.f32 %v3039_v41, %v1047_v29  ;;  %v1104_v37 = vadd.f32 %v3040_v24, %v1098_v47  ;;  %v1155_v56 = vadd.f32 %v3041_v10, %v1149_v35 }
 0x1b8   : > { %v802_v46 = vmax.f32 %v798_v13, 0.0  ;;  %v853_v23 = vmax.f32 %v849_v58, 0.0  ;;  %v904_v50 = vmax.f32 %v900_v12, 0.0  ;;  %v955_v42 = vmax.f32 %v951_v39, 0.0 }
 0x1b9   : > { %v1006_v0 = vmax.f32 %v1002_v25, 0.0  ;;  %v1057_v49 = vmax.f32 %v1053_v60, 0.0  ;;  %v1108_v43 = vmax.f32 %v1104_v37, 0.0  ;;  %v1159_v27 = vmax.f32 %v1155_v56, 0.0 }
 0x1ba   : > { %807 = vst.msk [vmem:[%s2697_s6 + $0x10] sm:$0xff] %vm804_vm2, %v802_v46  ;;  %v787_v5 = vmul.f32 %v3042_v7, %v755_v2  ;;  %v838_v3 = vmul.f32 %v3052_v57, %v755_v2  ;;  %v889_v51 = vmul.f32 %v3053_v36, %v755_v2  ;;  %v940_v20 = vmul.f32 %v3054_v14, %v755_v2  ;;  %v3057_v7 = vld [vmem:[#allocation42_spill] sm:$0xff]  ;;  %v3062_v57 = vld [vmem:[#allocation47_spill] sm:$0xff]  ;;  %v3063_v36 = vld [vmem:[#allocation48_spill] sm:$0xff] }
 0x1bb   : > { %1286 = vst.msk [vmem:[%s2697_s6 + $0x30] sm:$0xff] %vm804_vm2, %v853_v23  ;;  %v991_v26 = vmul.f32 %v2436_v15, %v755_v2  ;;  %v1042_v9 = vmul.f32 %v3055_v8, %v755_v2  ;;  %v1093_v54 = vmul.f32 %v3056_v61, %v755_v2  ;;  %v1144_v34 = vmul.f32 %v2445_v11, %v755_v2  ;;  %v3061_v15 = vld [vmem:[#allocation46_spill] sm:$0xff]  ;;  %v3064_v2 = vld [vmem:[#allocation49_spill] sm:$0xff] }
 0x1bc   : > { %1295 = vst.msk [vmem:[%s2697_s6 + $0x50] sm:$0xff] %vm804_vm2, %v904_v50  ;;  %v791_v17 = vadd.f32 %v787_v5, %v3057_v7  ;;  %v842_v32 = vadd.f32 %v838_v3, %v3058_v44  ;;  %v893_v31 = vadd.f32 %v889_v51, %v3059_v1  ;;  %v944_v55 = vadd.f32 %v940_v20, %v3060_v62 }
 0x1bd   : > { %1304 = vst.msk [vmem:[%s2697_s6 + $0x70] sm:$0xff] %vm804_vm2, %v955_v42  ;;  %v995_v53 = vadd.f32 %v991_v26, %v3061_v15  ;;  %v1046_v63 = vadd.f32 %v1042_v9, %v3062_v57  ;;  %v1097_v11 = vadd.f32 %v1093_v54, %v3063_v36  ;;  %v1148_v4 = vadd.f32 %v1144_v34, %v3064_v2 }
 0x1be   : > { %1313 = vst.msk [vmem:[%s2697_s6 + $0x90] sm:$0xff] %vm804_vm2, %v1006_v0  ;;  %v797_v14 = vadd.f32 %v3034_v48, %v791_v17  ;;  %v848_v52 = vadd.f32 %v3035_v22, %v842_v32  ;;  %v899_v19 = vadd.f32 %v3036_v16, %v893_v31  ;;  %v950_v8 = vadd.f32 %v3037_v28, %v944_v55 }
 0x1bf   : > { %1322 = vst.msk [vmem:[%s2697_s6 + $0xb0] sm:$0xff] %vm804_vm2, %v1057_v49  ;;  %v1001_v6 = vadd.f32 %v3038_v45, %v995_v53  ;;  %v1052_v61 = vadd.f32 %v3039_v41, %v1046_v63  ;;  %v1103_v22 = vadd.f32 %v3040_v24, %v1097_v11  ;;  %v1154_v28 = vadd.f32 %v3041_v10, %v1148_v4 }
 0x1c0   : > { %1331 = vst.msk [vmem:[%s2697_s6 + $0xd0] sm:$0xff] %vm804_vm2, %v1108_v43  ;;  %v801_v59 = vmax.f32 %v797_v14, 0.0  ;;  %v852_v48 = vmax.f32 %v848_v52, 0.0  ;;  %v903_v30 = vmax.f32 %v899_v19, 0.0  ;;  %v954_v16 = vmax.f32 %v950_v8, 0.0 }
 0x1c1   : > { %1340 = vst.msk [vmem:[%s2697_s6 + $0xf0] sm:$0xff] %vm804_vm2, %v1159_v27  ;;  %v1005_v45 = vmax.f32 %v1001_v6, 0.0  ;;  %v1056_v41 = vmax.f32 %v1052_v61, 0.0  ;;  %v1107_v24 = vmax.f32 %v1103_v22, 0.0  ;;  %v1158_v38 = vmax.f32 %v1154_v28, 0.0 }
 0x1c2   : > { %806 = vst.msk [vmem:[%s2697_s6 + $0x8] sm:$0xff] %vm804_vm2, %v801_v59 }
 0x1c3   : > { %1285 = vst.msk [vmem:[%s2697_s6 + $0x28] sm:$0xff] %vm804_vm2, %v852_v48 }
 0x1c4   : > { %1294 = vst.msk [vmem:[%s2697_s6 + $0x48] sm:$0xff] %vm804_vm2, %v903_v30 }
 0x1c5   : > { %1303 = vst.msk [vmem:[%s2697_s6 + $0x68] sm:$0xff] %vm804_vm2, %v954_v16 }
 0x1c6   : > { %1312 = vst.msk [vmem:[%s2697_s6 + $0x88] sm:$0xff] %vm804_vm2, %v1005_v45 }
 0x1c7   : > { %1321 = vst.msk [vmem:[%s2697_s6 + $0xa8] sm:$0xff] %vm804_vm2, %v1056_v41 }
 0x1c8   : > { %1330 = vst.msk [vmem:[%s2697_s6 + $0xc8] sm:$0xff] %vm804_vm2, %v1107_v24 }
 0x1c9   : > { %1339 = vst.msk [vmem:[%s2697_s6 + $0xe8] sm:$0xff] %vm804_vm2, %v1158_v38 }
 0x1ca   : > { %1470 = shalt.err (!%p1467_p8)
}
 0x1cb   : > { %s1519_s14 = smov 128   ;;  %s1520_s18 = smov 8  }
 0x1cc   : > { %1357 = dma.vmem_to_hbm [thread:$0]  (%p1579_p5), %s1180_s10, 4096, %s1182_s11, %s1167_s17, %s1519_s14, %s1519_s14, %s1520_s18  }
 0x1cd PF: > { %p1374_p9 = scmp.ge.s32.totalorder %s1513_s15, 2  ;;  %s1196_s21 = sand.u32 1, %s1501_s12  }
 0x1ce   : > { %s1197_s26 = scalar_lea.sflag [#allocation3], %s1196_s21 }
 0x1cf   : > { %p1367_p10 = pnand %p1374_p9, %p1583_p6 }
 0x1d1   : > { %p1368_p11 = pneg %p1367_p10 }
 0x1d3   : > { %1496 = dma.done.wait (%p1368_p11), %s1197_s26, 4096  }
 0x1d4   : > { %1498 = vsyncadd (%p1368_p11), %s1197_s26, 4294963200  ;;  %s3065_s15 = sld [smem:[#allocation12_spill]]  ;;  %s3068_s12 = smov %s1505_s13 }
 0x1d5   : > { %s3066_s27 = sld [smem:[#allocation11_spill]] }
 0x1d6   : > { %s3067_s14 = sld [smem:[#allocation13_spill]] }
 0x1da   : > { %p15_p12 = scmp.ge.s32.totalorder %s3065_s15, 4  }
 0x1db   : > { %s3069_s13 = smov %s3066_s27 }
 0x1dc   :  { %17 = sbr.rel (!%p15_p12) target bundleno = 9 (0x9), region = 83 }
 0x1e1   :  { %1203 = vsyncpa [#allocation3], 1 }
 0x1e2   :  { %1205 = vsyncpa [#allocation3 + $0x1], 1 }
 0x1e3   :  { %1206 = vsyncpa [#allocation4], 1 }
 0x1e4   :  { %1208 = vsyncpa [#allocation4 + $0x1], 1 }
 0x1e5   :  { %1209 = vsyncpa [#allocation6], 1 }

</bundles_post_ra>
